<compile_context>
chip_gen: v6e
topology: v6e:2x2x1
jax: 0.10.0
libtpu: 0.0.40
codegen_flags: <defaults>
</compile_context>

<pallas_src>
import jax
import jax.numpy as jnp
from jax.experimental import pallas as pl
from jax.experimental.pallas import tpu as pltpu

# ----------------------------- model config (small) --------------------------
VOCAB = 64
EMBED = 32
HEADS = 4
HEAD_DIM = EMBED // HEADS
FF = 64                # ff_dim (linear1 outputs 2*FF for the GEGLU gate/value split)
LAYERS = 2
BATCH = 2
SEQ = 8
LN_EPS = 1e-5

BS = BATCH * SEQ                   # 16 rows for every row-wise op
BHS = BATCH * HEADS * SEQ          # 64 (batch, head) block-diagonal packed rows
OUT_LANES = 128                    # logits(64) | hidden(32) | zero pad(32)
ATTN_LANES = LAYERS * BHS          # 128: both layers' packed attention probs

_INV_SQRT2 = 0.7071067811865476


# ------------------------------- slab layout ----------------------------------
def _make_layout():
    """Row/lane layout of the single packed parameter slab (all static)."""
    layout = {}
    row = 0

    def add(name, nrows, ncols):
        nonlocal row
        layout[name] = (row, nrows, ncols)
        row += -(-nrows // 8) * 8          # 8-row (sublane tile) alignment

    add('emb', VOCAB, EMBED)
    add('emb_g', 1, EMBED); add('emb_b', 1, EMBED)
    add('fin_g', 1, EMBED); add('fin_b', 1, EMBED)
    add('w_comb', EMBED, OUT_LANES)        # [logits proj | identity for hidden | 0]
    add('b_comb', 1, OUT_LANES)
    add('mask_bh', BHS, EMBED)             # head ownership mask for packed K/V
    add('rep', BHS, BS)                    # replication matrix (batch,head) packing
    add('samebatch', BS, BHS)              # same-batch mask on packed scores
    add('crossguard', BS, BHS)             # 1 - samebatch (denominator guard)
    add('block_sum', BHS, BHS)             # per-(batch,head)-block sum matrix
    for l in range(LAYERS):
        add(f'ln1_g{l}', 1, EMBED); add(f'ln1_b{l}', 1, EMBED)
        add(f'wq{l}', EMBED, EMBED); add(f'bq{l}', 1, EMBED)
        add(f'wk{l}', EMBED, EMBED); add(f'bk{l}', 1, EMBED)
        add(f'wv{l}', EMBED, EMBED); add(f'bv{l}', 1, EMBED)
        add(f'wo{l}', EMBED, EMBED); add(f'bo{l}', 1, EMBED)
        add(f'ln2_g{l}', 1, EMBED); add(f'ln2_b{l}', 1, EMBED)
        add(f'w1g{l}', EMBED, FF);  add(f'b1g{l}', 1, FF)
        add(f'w1v{l}', EMBED, FF);  add(f'b1v{l}', 1, FF)
        add(f'w2{l}', FF, EMBED);   add(f'b2{l}', 1, EMBED)
    return layout, row


LAYOUT, SLAB_ROWS = _make_layout()


# ----------------------------- in-kernel helpers -----------------------------
def _layernorm(x, gamma, beta):
    # x: [R, D]; gamma/beta: [1, D] (broadcast). PyTorch LayerNorm (biased var).
    mean = jnp.mean(x, axis=-1, keepdims=True)
    var = jnp.mean((x - mean) * (x - mean), axis=-1, keepdims=True)
    return (x - mean) * jax.lax.rsqrt(var + LN_EPS) * gamma + beta


def _erf(x):
    # Abramowitz & Stegun 7.1.26 rational approx, |err| <= 1.5e-7.
    a1, a2, a3, a4, a5 = 0.254829592, -0.284496736, 1.421413741, -1.453152027, 1.061405429
    p = 0.3275911
    ax = jnp.abs(x)
    t = pl.reciprocal(1.0 + p * ax, approx=True)     # EUP slot, err << tolerance
    poly = ((((a5 * t + a4) * t + a3) * t + a2) * t + a1) * t
    y = 1.0 - poly * jnp.exp(-ax * ax)
    return jnp.where(x >= 0, y, -y)


def _gelu_exact(x):
    # nn.GELU() default = exact erf-based GELU.
    return 0.5 * x * (1.0 + _erf(x * _INV_SQRT2))


def _matmul(a, b):
    return jnp.dot(a, b, preferred_element_type=jnp.float32)


def _dot_t(a, b):
    # a: [M, D], b: [N, D]  ->  a @ b.T : [M, N]  (no explicit transpose)
    return jax.lax.dot_general(a, b, (((1,), (1,)), ((), ())),
                               preferred_element_type=jnp.float32)


# --------------------------------- fused kernel -------------------------------
def fused_forward_kernel(ids_ref, slab_ref, out_ref, attn_ref):
    def param(name):
        r0, nr, nc = LAYOUT[name]
        return slab_ref[pl.ds(r0, nr), pl.ds(0, nc)]     # static slice, lane offset 0

    # Precomputed constants (packed into the slab; no in-kernel iota work).
    mask_bh = param('mask_bh')          # [B*H*S, E]
    rep = param('rep')                  # [B*H*S, B*S]
    samebatch = param('samebatch')      # [B*S, B*H*S]
    crossguard = param('crossguard')    # 1 - samebatch
    block_sum = param('block_sum')      # [B*H*S, B*H*S]

    # In-kernel embedding gather: one-hot (iota compare) + one MXU matmul.
    ids = ids_ref[...]                                            # [B*S, 1] int32
    onehot = (ids == jax.lax.broadcasted_iota(jnp.int32, (BS, VOCAB), 1)
              ).astype(jnp.float32)                               # [B*S, VOCAB]
    x = _matmul(onehot, param('emb'))                             # [B*S, E]
    x = _layernorm(x, param('emb_g'), param('emb_b'))

    attn_parts = []
    for l in range(LAYERS):                       # static unroll over layers
        xn = _layernorm(x, param(f'ln1_g{l}'), param(f'ln1_b{l}'))
        q = _matmul(xn, param(f'wq{l}')) + param(f'bq{l}')        # scale folded in
        k = _matmul(xn, param(f'wk{l}')) + param(f'bk{l}')
        v = _matmul(xn, param(f'wv{l}')) + param(f'bv{l}')

        # (batch, head) block-diagonal packing via replication-matrix matmuls
        # (no sublane concatenates): row j = b*H*S + h*S + s keeps only the
        # embedding columns owned by head h.
        kbd = _matmul(rep, k) * mask_bh                           # [B*H*S, E]
        vbd = _matmul(rep, v) * mask_bh                           # [B*H*S, E]

        # All batches + heads in one score matmul.
        s = _dot_t(q, kbd)                                        # [B*S, B*H*S]
        # Global row max cancels within each (batch, head) block normalization.
        # TODO(synk): per-block max would be more robust for extreme score spreads.
        s = s - jnp.max(s, axis=-1, keepdims=True)
        p = jnp.exp(s) * samebatch                                # zero cross-batch
        denom = _matmul(p, block_sum) + crossguard                # per-block sums; guard=1
        p = p * pl.reciprocal(denom, approx=True)                 # softmax per block
        attn_parts.append(p)

        attn_out = _matmul(p, vbd)                                # [B*S, E] head-concat
        x = x + _matmul(attn_out, param(f'wo{l}')) + param(f'bo{l}')

        xn2 = _layernorm(x, param(f'ln2_g{l}'), param(f'ln2_b{l}'))
        gate = _matmul(xn2, param(f'w1g{l}')) + param(f'b1g{l}')  # separate weight
        value = _matmul(xn2, param(f'w1v{l}')) + param(f'b1v{l}') # blocks, no lane slices
        ff = _gelu_exact(gate) * value                            # GEGLU
        x = x + _matmul(ff, param(f'w2{l}')) + param(f'b2{l}')

    hidden = _layernorm(x, param('fin_g'), param('fin_b'))
    # Combined projection: lanes 0..63 logits, lanes 64..95 hidden (identity block).
    out_ref[...] = _matmul(hidden, param('w_comb')) + param('b_comb')     # [B*S, 128]
    attn_ref[...] = jnp.concatenate(attn_parts, axis=-1)                  # [B*S, 128]


# ------------------------------ packing & wrapper ------------------------------
def pack_params(params):
    """Pack everything the kernel needs into ONE contiguous f32 [SLAB_ROWS,128]
    slab: weights, biases, LN params, embedding table, attention masks. The
    attention scale is folded into Wq/bq; the output projection is augmented
    with an identity block so `hidden` rides inside the logits output."""
    scale = HEAD_DIM ** (-0.5)
    entries = {}
    entries['emb'] = params['token_embedding']
    entries['emb_g'] = params['emb_ln_g']; entries['emb_b'] = params['emb_ln_b']
    entries['fin_g'] = params['final_ln_g']; entries['fin_b'] = params['final_ln_b']

    w_comb = jnp.zeros((EMBED, OUT_LANES), jnp.float32)
    w_comb = w_comb.at[:, :VOCAB].set(params['w_out'])
    w_comb = w_comb.at[:, VOCAB:VOCAB + EMBED].set(jnp.eye(EMBED, dtype=jnp.float32))
    entries['w_comb'] = w_comb
    entries['b_comb'] = jnp.zeros((1, OUT_LANES), jnp.float32).at[:, :VOCAB].set(params['b_out'])

    j = jnp.arange(BHS)
    e = jnp.arange(EMBED)
    i = jnp.arange(BS)
    entries['mask_bh'] = (((j[:, None] // SEQ) % HEADS) == (e[None, :] // HEAD_DIM)
                          ).astype(jnp.float32)
    entries['rep'] = (i[None, :] == ((j // (HEADS * SEQ)) * SEQ + (j % SEQ))[:, None]
                      ).astype(jnp.float32)
    samebatch = ((i[:, None] // SEQ) == (j[None, :] // (HEADS * SEQ))).astype(jnp.float32)
    entries['samebatch'] = samebatch
    entries['crossguard'] = 1.0 - samebatch
    entries['block_sum'] = ((j[:, None] // SEQ) == (j[None, :] // SEQ)).astype(jnp.float32)

    for l, blk in enumerate(params['blocks']):
        (ln1g, ln1b, wq, bq, wk, bk, wv, bv, wo, bo,
         ln2g, ln2b, w1, b1, w2, b2) = blk
        entries[f'ln1_g{l}'] = ln1g; entries[f'ln1_b{l}'] = ln1b
        entries[f'wq{l}'] = wq * scale; entries[f'bq{l}'] = bq * scale
        entries[f'wk{l}'] = wk; entries[f'bk{l}'] = bk
        entries[f'wv{l}'] = wv; entries[f'bv{l}'] = bv
        entries[f'wo{l}'] = wo; entries[f'bo{l}'] = bo
        entries[f'ln2_g{l}'] = ln2g; entries[f'ln2_b{l}'] = ln2b
        entries[f'w1g{l}'] = w1[:, :FF]; entries[f'b1g{l}'] = b1[:, :FF]
        entries[f'w1v{l}'] = w1[:, FF:]; entries[f'b1v{l}'] = b1[:, FF:]
        entries[f'w2{l}'] = w2; entries[f'b2{l}'] = b2

    slab = jnp.zeros((SLAB_ROWS, 128), jnp.float32)
    for name, arr in entries.items():
        r0, nr, nc = LAYOUT[name]
        slab = slab.at[r0:r0 + nr, 0:nc].set(
            jnp.asarray(arr, jnp.float32).reshape(nr, nc))
    return slab


@jax.jit
def transformer_model_forward(token_ids, slab):
    ids = token_ids.reshape(BS, 1).astype(jnp.int32)

    out128, attn_slab = pl.pallas_call(
        fused_forward_kernel,
        out_shape=(jax.ShapeDtypeStruct((BS, OUT_LANES), jnp.float32),
                   jax.ShapeDtypeStruct((BS, ATTN_LANES), jnp.float32)),
        in_specs=[pl.BlockSpec(memory_space=pltpu.MemorySpace.VMEM),
                  pl.BlockSpec(memory_space=pltpu.MemorySpace.VMEM)],
        out_specs=(pl.BlockSpec(memory_space=pltpu.MemorySpace.VMEM),
                   pl.BlockSpec(memory_space=pltpu.MemorySpace.VMEM)),
    )(ids, slab)

    logits = out128[:, :VOCAB].reshape(BATCH, SEQ, VOCAB)
    hidden = out128[:, VOCAB:VOCAB + EMBED].reshape(BATCH, SEQ, EMBED)
    # Unpack attention: slab[b*S+q, l*64 + b2*32 + h*8 + k]; keep the b==b2 diagonal.
    attn6 = attn_slab.reshape(BATCH, SEQ, LAYERS, BATCH, HEADS, SEQ)
    bidx = jnp.arange(BATCH)
    attn = attn6[bidx, :, :, bidx]                 # [B, S, L, H, S]
    attn = attn.transpose(2, 0, 3, 1, 4)           # [L, B, H, S, S]
    attentions = [attn[l] for l in range(LAYERS)]
    return {'logits': logits, 'hidden_states': hidden,
            'attentions': attentions, 'past_key_values': None}


# ----------------------------- parameter init --------------------------------
def _trunc_normal(key, shape, std=0.02):
    return (std * jax.random.truncated_normal(key, -2.0, 2.0, shape)).astype(jnp.float32)


def init_params(key):
    keys = jax.random.split(key, 2 + LAYERS * 6)
    ki = iter(keys)
    ones = lambda d: jnp.ones((1, d), jnp.float32)
    zeros = lambda d: jnp.zeros((1, d), jnp.float32)
    params = {
        'token_embedding': _trunc_normal(next(ki), (VOCAB, EMBED)),
        'emb_ln_g': ones(EMBED), 'emb_ln_b': zeros(EMBED),
        'final_ln_g': ones(EMBED), 'final_ln_b': zeros(EMBED),
        'w_out': _trunc_normal(next(ki), (VOCAB, EMBED)).T,   # [E, V]
        'b_out': zeros(VOCAB),
        'blocks': [],
    }
    for _ in range(LAYERS):
        wq = _trunc_normal(next(ki), (EMBED, EMBED)).T
        wk = _trunc_normal(next(ki), (EMBED, EMBED)).T
        wv = _trunc_normal(next(ki), (EMBED, EMBED)).T
        wo = _trunc_normal(next(ki), (EMBED, EMBED)).T
        w1 = _trunc_normal(next(ki), (2 * FF, EMBED)).T       # [E, 2*FF]
        w2 = _trunc_normal(next(ki), (EMBED, FF)).T           # [FF, E]
        blk = (ones(EMBED), zeros(EMBED),
               wq, zeros(EMBED), wk, zeros(EMBED), wv, zeros(EMBED), wo, zeros(EMBED),
               ones(EMBED), zeros(EMBED),
               w1, zeros(2 * FF), w2, zeros(EMBED))
        params['blocks'].append(blk)
    return params


# --------------------------- pure-JAX reference -------------------------------
def _ref_layernorm(x, g, b):
    mean = x.mean(-1, keepdims=True)
    var = ((x - mean) ** 2).mean(-1, keepdims=True)
    return (x - mean) / jnp.sqrt(var + LN_EPS) * g + b


def reference_forward(token_ids, params):
    x = params['token_embedding'][token_ids]
    x = _ref_layernorm(x, params['emb_ln_g'][0], params['emb_ln_b'][0])
    attns = []
    for blk in params['blocks']:
        (ln1g, ln1b, wq, bq, wk, bk, wv, bv, wo, bo,
         ln2g, ln2b, w1, b1, w2, b2) = blk
        B, S, E = x.shape
        xn = _ref_layernorm(x, ln1g[0], ln1b[0])
        q = xn @ wq + bq[0]
        k = xn @ wk + bk[0]
        v = xn @ wv + bv[0]
        qh = q.reshape(B, S, HEADS, HEAD_DIM).transpose(0, 2, 1, 3)
        kh = k.reshape(B, S, HEADS, HEAD_DIM).transpose(0, 2, 1, 3)
        vh = v.reshape(B, S, HEADS, HEAD_DIM).transpose(0, 2, 1, 3)
        s = jnp.einsum('bhqd,bhkd->bhqk', qh, kh) * HEAD_DIM ** (-0.5)
        p = jax.nn.softmax(s, axis=-1)
        attns.append(p)
        o = jnp.einsum('bhqk,bhkd->bhqd', p, vh).transpose(0, 2, 1, 3).reshape(B, S, E)
        x = x + (o @ wo + bo[0])
        xn2 = _ref_layernorm(x, ln2g[0], ln2b[0])
        h1 = xn2 @ w1 + b1[0]
        gate, value = h1[..., :FF], h1[..., FF:]
        ff = jax.nn.gelu(gate, approximate=False) * value
        x = x + (ff @ w2 + b2[0])
    hidden = _ref_layernorm(x, params['final_ln_g'][0], params['final_ln_b'][0])
    logits = hidden @ params['w_out'] + params['b_out'][0]
    return {'logits': logits, 'hidden_states': hidden, 'attentions': attns}


# ------------------------------------ main ------------------------------------
if __name__ == "__main__":
    root = jax.random.PRNGKey(0)
    pkey, dkey = jax.random.split(root)
    params = init_params(pkey)
    token_ids = jax.random.randint(dkey, (BATCH, SEQ), 0, VOCAB, dtype=jnp.int32)

    slab = pack_params(params)      # one-time weight packing, outside the forward

    out = transformer_model_forward(token_ids, slab)
    jax.block_until_ready(out['logits'])

    ref = reference_forward(token_ids, params)
    assert out['logits'].shape == (BATCH, SEQ, VOCAB)
    assert out['hidden_states'].shape == (BATCH, SEQ, EMBED)
    assert out['attentions'][0].shape == (BATCH, HEADS, SEQ, SEQ)
    assert jnp.allclose(out['logits'], ref['logits'], rtol=2e-3, atol=2e-3)
    assert jnp.allclose(out['hidden_states'], ref['hidden_states'], rtol=2e-3, atol=2e-3)
    for a, b in zip(out['attentions'], ref['attentions']):
        assert jnp.allclose(a, b, rtol=2e-3, atol=2e-3)

    print("KERNEL_OK")
</pallas_src>

<mosaic_0001>
module attributes {stable_mosaic.version = 11 : i64} {
  func.func @fused_forward_kernel(%arg0: memref<16x1xi32, #tpu.memory_space<vmem>>, %arg1: memref<1048x128xf32, #tpu.memory_space<vmem>>, %arg2: memref<16x128xf32, #tpu.memory_space<vmem>>, %arg3: memref<16x128xf32, #tpu.memory_space<vmem>>) attributes {dimension_semantics = [], scalar_prefetch = 0 : i64, scratch_operands = 0 : i64, tpu.core_type = #tpu.core_type<tc>} {
    %c136 = arith.constant 136 : index
    %c0 = arith.constant 0 : index
    %0 = vector.load %arg1[%c136, %c0] : memref<1048x128xf32, #tpu.memory_space<vmem>>, vector<64x32xf32>
    %c200 = arith.constant 200 : index
    %c0_0 = arith.constant 0 : index
    %1 = vector.load %arg1[%c200, %c0_0] : memref<1048x128xf32, #tpu.memory_space<vmem>>, vector<64x16xf32>
    %c264 = arith.constant 264 : index
    %c0_1 = arith.constant 0 : index
    %2 = vector.load %arg1[%c264, %c0_1] : memref<1048x128xf32, #tpu.memory_space<vmem>>, vector<16x64xf32>
    %c280 = arith.constant 280 : index
    %c0_2 = arith.constant 0 : index
    %3 = vector.load %arg1[%c280, %c0_2] : memref<1048x128xf32, #tpu.memory_space<vmem>>, vector<16x64xf32>
    %c296 = arith.constant 296 : index
    %c0_3 = arith.constant 0 : index
    %4 = vector.load %arg1[%c296, %c0_3] : memref<1048x128xf32, #tpu.memory_space<vmem>>, vector<64x64xf32>
    %c0_4 = arith.constant 0 : index
    %c0_5 = arith.constant 0 : index
    %5 = vector.load %arg0[%c0_4, %c0_5] : memref<16x1xi32, #tpu.memory_space<vmem>>, vector<16x1xi32>
    %6 = tpu.iota {dimensions = array<i32: 1>} : vector<16x64xi32>
    %7 = vector.broadcast %5 : vector<16x1xi32> to vector<16x64xi32>
    %8 = arith.cmpi eq, %7, %6 : vector<16x64xi32>
    %9 = arith.extui %8 : vector<16x64xi1> to vector<16x64xi32>
    %10 = arith.sitofp %9 : vector<16x64xi32> to vector<16x64xf32>
    %c0_6 = arith.constant 0 : index
    %c0_7 = arith.constant 0 : index
    %11 = vector.load %arg1[%c0_6, %c0_7] : memref<1048x128xf32, #tpu.memory_space<vmem>>, vector<64x32xf32>
    %cst = arith.constant dense<0.000000e+00> : vector<16x32xf32>
    %12 = tpu.matmul %10, %11, %cst {dimension_numbers = #tpu.dot_dimension_numbers<[1], [0], [0], [1], [0, 0, 1, 1], [], []>} : vector<16x64xf32>, vector<64x32xf32>, vector<16x32xf32> -> vector<16x32xf32>
    %c64 = arith.constant 64 : index
    %c0_8 = arith.constant 0 : index
    %13 = vector.load %arg1[%c64, %c0_8] : memref<1048x128xf32, #tpu.memory_space<vmem>>, vector<1x32xf32>
    %c72 = arith.constant 72 : index
    %c0_9 = arith.constant 0 : index
    %14 = vector.load %arg1[%c72, %c0_9] : memref<1048x128xf32, #tpu.memory_space<vmem>>, vector<1x32xf32>
    %cst_10 = arith.constant dense<0.000000e+00> : vector<16xf32>
    %15 = vector.multi_reduction <add>, %12, %cst_10 [1] : vector<16x32xf32> to vector<16xf32>
    %16 = vector.shape_cast %15 : vector<16xf32> to vector<16x1xf32>
    %cst_11 = arith.constant 3.200000e+01 : f32
    %17 = vector.broadcast %cst_11 : f32 to vector<16x1xf32>
    %18 = arith.divf %16, %17 : vector<16x1xf32>
    %19 = vector.broadcast %18 : vector<16x1xf32> to vector<16x32xf32>
    %20 = arith.subf %12, %19 : vector<16x32xf32>
    %21 = vector.broadcast %18 : vector<16x1xf32> to vector<16x32xf32>
    %22 = arith.subf %12, %21 : vector<16x32xf32>
    %23 = arith.mulf %20, %22 : vector<16x32xf32>
    %cst_12 = arith.constant dense<0.000000e+00> : vector<16xf32>
    %24 = vector.multi_reduction <add>, %23, %cst_12 [1] : vector<16x32xf32> to vector<16xf32>
    %25 = vector.shape_cast %24 : vector<16xf32> to vector<16x1xf32>
    %cst_13 = arith.constant 3.200000e+01 : f32
    %26 = vector.broadcast %cst_13 : f32 to vector<16x1xf32>
    %27 = arith.divf %25, %26 : vector<16x1xf32>
    %28 = vector.broadcast %18 : vector<16x1xf32> to vector<16x32xf32>
    %29 = arith.subf %12, %28 : vector<16x32xf32>
    %cst_14 = arith.constant 9.99999974E-6 : f32
    %30 = vector.broadcast %cst_14 : f32 to vector<16x1xf32>
    %31 = arith.addf %27, %30 : vector<16x1xf32>
    %32 = math.rsqrt %31 : vector<16x1xf32>
    %33 = vector.broadcast %32 : vector<16x1xf32> to vector<16x32xf32>
    %34 = arith.mulf %29, %33 : vector<16x32xf32>
    %35 = vector.broadcast %13 : vector<1x32xf32> to vector<16x32xf32>
    %36 = arith.mulf %34, %35 : vector<16x32xf32>
    %37 = vector.broadcast %14 : vector<1x32xf32> to vector<16x32xf32>
    %38 = arith.addf %36, %37 : vector<16x32xf32>
    %c360 = arith.constant 360 : index
    %c0_15 = arith.constant 0 : index
    %39 = vector.load %arg1[%c360, %c0_15] : memref<1048x128xf32, #tpu.memory_space<vmem>>, vector<1x32xf32>
    %c368 = arith.constant 368 : index
    %c0_16 = arith.constant 0 : index
    %40 = vector.load %arg1[%c368, %c0_16] : memref<1048x128xf32, #tpu.memory_space<vmem>>, vector<1x32xf32>
    %cst_17 = arith.constant dense<0.000000e+00> : vector<16xf32>
    %41 = vector.multi_reduction <add>, %38, %cst_17 [1] : vector<16x32xf32> to vector<16xf32>
    %42 = vector.shape_cast %41 : vector<16xf32> to vector<16x1xf32>
    %cst_18 = arith.constant 3.200000e+01 : f32
    %43 = vector.broadcast %cst_18 : f32 to vector<16x1xf32>
    %44 = arith.divf %42, %43 : vector<16x1xf32>
    %45 = vector.broadcast %44 : vector<16x1xf32> to vector<16x32xf32>
    %46 = arith.subf %38, %45 : vector<16x32xf32>
    %47 = vector.broadcast %44 : vector<16x1xf32> to vector<16x32xf32>
    %48 = arith.subf %38, %47 : vector<16x32xf32>
    %49 = arith.mulf %46, %48 : vector<16x32xf32>
    %cst_19 = arith.constant dense<0.000000e+00> : vector<16xf32>
    %50 = vector.multi_reduction <add>, %49, %cst_19 [1] : vector<16x32xf32> to vector<16xf32>
    %51 = vector.shape_cast %50 : vector<16xf32> to vector<16x1xf32>
    %cst_20 = arith.constant 3.200000e+01 : f32
    %52 = vector.broadcast %cst_20 : f32 to vector<16x1xf32>
    %53 = arith.divf %51, %52 : vector<16x1xf32>
    %54 = vector.broadcast %44 : vector<16x1xf32> to vector<16x32xf32>
    %55 = arith.subf %38, %54 : vector<16x32xf32>
    %cst_21 = arith.constant 9.99999974E-6 : f32
    %56 = vector.broadcast %cst_21 : f32 to vector<16x1xf32>
    %57 = arith.addf %53, %56 : vector<16x1xf32>
    %58 = math.rsqrt %57 : vector<16x1xf32>
    %59 = vector.broadcast %58 : vector<16x1xf32> to vector<16x32xf32>
    %60 = arith.mulf %55, %59 : vector<16x32xf32>
    %61 = vector.broadcast %39 : vector<1x32xf32> to vector<16x32xf32>
    %62 = arith.mulf %60, %61 : vector<16x32xf32>
    %63 = vector.broadcast %40 : vector<1x32xf32> to vector<16x32xf32>
    %64 = arith.addf %62, %63 : vector<16x32xf32>
    %c376 = arith.constant 376 : index
    %c0_22 = arith.constant 0 : index
    %65 = vector.load %arg1[%c376, %c0_22] : memref<1048x128xf32, #tpu.memory_space<vmem>>, vector<32x32xf32>
    %cst_23 = arith.constant dense<0.000000e+00> : vector<16x32xf32>
    %66 = tpu.matmul %64, %65, %cst_23 {dimension_numbers = #tpu.dot_dimension_numbers<[1], [0], [0], [1], [0, 0, 1, 1], [], []>} : vector<16x32xf32>, vector<32x32xf32>, vector<16x32xf32> -> vector<16x32xf32>
    %c408 = arith.constant 408 : index
    %c0_24 = arith.constant 0 : index
    %67 = vector.load %arg1[%c408, %c0_24] : memref<1048x128xf32, #tpu.memory_space<vmem>>, vector<1x32xf32>
    %68 = vector.broadcast %67 : vector<1x32xf32> to vector<16x32xf32>
    %69 = arith.addf %66, %68 : vector<16x32xf32>
    %c416 = arith.constant 416 : index
    %c0_25 = arith.constant 0 : index
    %70 = vector.load %arg1[%c416, %c0_25] : memref<1048x128xf32, #tpu.memory_space<vmem>>, vector<32x32xf32>
    %cst_26 = arith.constant dense<0.000000e+00> : vector<16x32xf32>
    %71 = tpu.matmul %64, %70, %cst_26 {dimension_numbers = #tpu.dot_dimension_numbers<[1], [0], [0], [1], [0, 0, 1, 1], [], []>} : vector<16x32xf32>, vector<32x32xf32>, vector<16x32xf32> -> vector<16x32xf32>
    %c448 = arith.constant 448 : index
    %c0_27 = arith.constant 0 : index
    %72 = vector.load %arg1[%c448, %c0_27] : memref<1048x128xf32, #tpu.memory_space<vmem>>, vector<1x32xf32>
    %73 = vector.broadcast %72 : vector<1x32xf32> to vector<16x32xf32>
    %74 = arith.addf %71, %73 : vector<16x32xf32>
    %c456 = arith.constant 456 : index
    %c0_28 = arith.constant 0 : index
    %75 = vector.load %arg1[%c456, %c0_28] : memref<1048x128xf32, #tpu.memory_space<vmem>>, vector<32x32xf32>
    %cst_29 = arith.constant dense<0.000000e+00> : vector<16x32xf32>
    %76 = tpu.matmul %64, %75, %cst_29 {dimension_numbers = #tpu.dot_dimension_numbers<[1], [0], [0], [1], [0, 0, 1, 1], [], []>} : vector<16x32xf32>, vector<32x32xf32>, vector<16x32xf32> -> vector<16x32xf32>
    %c488 = arith.constant 488 : index
    %c0_30 = arith.constant 0 : index
    %77 = vector.load %arg1[%c488, %c0_30] : memref<1048x128xf32, #tpu.memory_space<vmem>>, vector<1x32xf32>
    %78 = vector.broadcast %77 : vector<1x32xf32> to vector<16x32xf32>
    %79 = arith.addf %76, %78 : vector<16x32xf32>
    %cst_31 = arith.constant dense<0.000000e+00> : vector<64x32xf32>
    %80 = tpu.matmul %1, %74, %cst_31 {dimension_numbers = #tpu.dot_dimension_numbers<[1], [0], [0], [1], [0, 0, 1, 1], [], []>} : vector<64x16xf32>, vector<16x32xf32>, vector<64x32xf32> -> vector<64x32xf32>
    %81 = arith.mulf %80, %0 : vector<64x32xf32>
    %cst_32 = arith.constant dense<0.000000e+00> : vector<64x32xf32>
    %82 = tpu.matmul %1, %79, %cst_32 {dimension_numbers = #tpu.dot_dimension_numbers<[1], [0], [0], [1], [0, 0, 1, 1], [], []>} : vector<64x16xf32>, vector<16x32xf32>, vector<64x32xf32> -> vector<64x32xf32>
    %83 = arith.mulf %82, %0 : vector<64x32xf32>
    %cst_33 = arith.constant dense<0.000000e+00> : vector<16x64xf32>
    %84 = tpu.matmul %69, %81, %cst_33 {dimension_numbers = #tpu.dot_dimension_numbers<[1], [1], [0], [0], [0, 0, 1, 0], [], []>} : vector<16x32xf32>, vector<64x32xf32>, vector<16x64xf32> -> vector<16x64xf32>
    %cst_34 = arith.constant dense<0xFF800000> : vector<16xf32>
    %85 = vector.multi_reduction <maximumf>, %84, %cst_34 [1] : vector<16x64xf32> to vector<16xf32>
    %86 = vector.shape_cast %85 : vector<16xf32> to vector<16x1xf32>
    %87 = vector.broadcast %86 : vector<16x1xf32> to vector<16x64xf32>
    %88 = arith.subf %84, %87 : vector<16x64xf32>
    %89 = math.exp %88 : vector<16x64xf32>
    %90 = arith.mulf %89, %2 : vector<16x64xf32>
    %cst_35 = arith.constant dense<0.000000e+00> : vector<16x64xf32>
    %91 = tpu.matmul %90, %4, %cst_35 {dimension_numbers = #tpu.dot_dimension_numbers<[1], [0], [0], [1], [0, 0, 1, 1], [], []>} : vector<16x64xf32>, vector<64x64xf32>, vector<16x64xf32> -> vector<16x64xf32>
    %92 = arith.addf %91, %3 : vector<16x64xf32>
    %93 = tpu.reciprocal %92 {approx = true} : vector<16x64xf32> -> vector<16x64xf32>
    %94 = arith.mulf %90, %93 : vector<16x64xf32>
    %cst_36 = arith.constant dense<0.000000e+00> : vector<16x32xf32>
    %95 = tpu.matmul %94, %83, %cst_36 {dimension_numbers = #tpu.dot_dimension_numbers<[1], [0], [0], [1], [0, 0, 1, 1], [], []>} : vector<16x64xf32>, vector<64x32xf32>, vector<16x32xf32> -> vector<16x32xf32>
    %c496 = arith.constant 496 : index
    %c0_37 = arith.constant 0 : index
    %96 = vector.load %arg1[%c496, %c0_37] : memref<1048x128xf32, #tpu.memory_space<vmem>>, vector<32x32xf32>
    %cst_38 = arith.constant dense<0.000000e+00> : vector<16x32xf32>
    %97 = tpu.matmul %95, %96, %cst_38 {dimension_numbers = #tpu.dot_dimension_numbers<[1], [0], [0], [1], [0, 0, 1, 1], [], []>} : vector<16x32xf32>, vector<32x32xf32>, vector<16x32xf32> -> vector<16x32xf32>
    %98 = arith.addf %38, %97 : vector<16x32xf32>
    %c528 = arith.constant 528 : index
    %c0_39 = arith.constant 0 : index
    %99 = vector.load %arg1[%c528, %c0_39] : memref<1048x128xf32, #tpu.memory_space<vmem>>, vector<1x32xf32>
    %100 = vector.broadcast %99 : vector<1x32xf32> to vector<16x32xf32>
    %101 = arith.addf %98, %100 : vector<16x32xf32>
    %c536 = arith.constant 536 : index
    %c0_40 = arith.constant 0 : index
    %102 = vector.load %arg1[%c536, %c0_40] : memref<1048x128xf32, #tpu.memory_space<vmem>>, vector<1x32xf32>
    %c544 = arith.constant 544 : index
    %c0_41 = arith.constant 0 : index
    %103 = vector.load %arg1[%c544, %c0_41] : memref<1048x128xf32, #tpu.memory_space<vmem>>, vector<1x32xf32>
    %cst_42 = arith.constant dense<0.000000e+00> : vector<16xf32>
    %104 = vector.multi_reduction <add>, %101, %cst_42 [1] : vector<16x32xf32> to vector<16xf32>
    %105 = vector.shape_cast %104 : vector<16xf32> to vector<16x1xf32>
    %cst_43 = arith.constant 3.200000e+01 : f32
    %106 = vector.broadcast %cst_43 : f32 to vector<16x1xf32>
    %107 = arith.divf %105, %106 : vector<16x1xf32>
    %108 = vector.broadcast %107 : vector<16x1xf32> to vector<16x32xf32>
    %109 = arith.subf %101, %108 : vector<16x32xf32>
    %110 = vector.broadcast %107 : vector<16x1xf32> to vector<16x32xf32>
    %111 = arith.subf %101, %110 : vector<16x32xf32>
    %112 = arith.mulf %109, %111 : vector<16x32xf32>
    %cst_44 = arith.constant dense<0.000000e+00> : vector<16xf32>
    %113 = vector.multi_reduction <add>, %112, %cst_44 [1] : vector<16x32xf32> to vector<16xf32>
    %114 = vector.shape_cast %113 : vector<16xf32> to vector<16x1xf32>
    %cst_45 = arith.constant 3.200000e+01 : f32
    %115 = vector.broadcast %cst_45 : f32 to vector<16x1xf32>
    %116 = arith.divf %114, %115 : vector<16x1xf32>
    %117 = vector.broadcast %107 : vector<16x1xf32> to vector<16x32xf32>
    %118 = arith.subf %101, %117 : vector<16x32xf32>
    %cst_46 = arith.constant 9.99999974E-6 : f32
    %119 = vector.broadcast %cst_46 : f32 to vector<16x1xf32>
    %120 = arith.addf %116, %119 : vector<16x1xf32>
    %121 = math.rsqrt %120 : vector<16x1xf32>
    %122 = vector.broadcast %121 : vector<16x1xf32> to vector<16x32xf32>
    %123 = arith.mulf %118, %122 : vector<16x32xf32>
    %124 = vector.broadcast %102 : vector<1x32xf32> to vector<16x32xf32>
    %125 = arith.mulf %123, %124 : vector<16x32xf32>
    %126 = vector.broadcast %103 : vector<1x32xf32> to vector<16x32xf32>
    %127 = arith.addf %125, %126 : vector<16x32xf32>
    %c552 = arith.constant 552 : index
    %c0_47 = arith.constant 0 : index
    %128 = vector.load %arg1[%c552, %c0_47] : memref<1048x128xf32, #tpu.memory_space<vmem>>, vector<32x64xf32>
    %cst_48 = arith.constant dense<0.000000e+00> : vector<16x64xf32>
    %129 = tpu.matmul %127, %128, %cst_48 {dimension_numbers = #tpu.dot_dimension_numbers<[1], [0], [0], [1], [0, 0, 1, 1], [], []>} : vector<16x32xf32>, vector<32x64xf32>, vector<16x64xf32> -> vector<16x64xf32>
    %c584 = arith.constant 584 : index
    %c0_49 = arith.constant 0 : index
    %130 = vector.load %arg1[%c584, %c0_49] : memref<1048x128xf32, #tpu.memory_space<vmem>>, vector<1x64xf32>
    %131 = vector.broadcast %130 : vector<1x64xf32> to vector<16x64xf32>
    %132 = arith.addf %129, %131 : vector<16x64xf32>
    %c592 = arith.constant 592 : index
    %c0_50 = arith.constant 0 : index
    %133 = vector.load %arg1[%c592, %c0_50] : memref<1048x128xf32, #tpu.memory_space<vmem>>, vector<32x64xf32>
    %cst_51 = arith.constant dense<0.000000e+00> : vector<16x64xf32>
    %134 = tpu.matmul %127, %133, %cst_51 {dimension_numbers = #tpu.dot_dimension_numbers<[1], [0], [0], [1], [0, 0, 1, 1], [], []>} : vector<16x32xf32>, vector<32x64xf32>, vector<16x64xf32> -> vector<16x64xf32>
    %c624 = arith.constant 624 : index
    %c0_52 = arith.constant 0 : index
    %135 = vector.load %arg1[%c624, %c0_52] : memref<1048x128xf32, #tpu.memory_space<vmem>>, vector<1x64xf32>
    %136 = vector.broadcast %135 : vector<1x64xf32> to vector<16x64xf32>
    %137 = arith.addf %134, %136 : vector<16x64xf32>
    %cst_53 = arith.constant 5.000000e-01 : f32
    %138 = vector.broadcast %cst_53 : f32 to vector<16x64xf32>
    %139 = arith.mulf %138, %132 : vector<16x64xf32>
    %cst_54 = arith.constant 0.707106769 : f32
    %140 = vector.broadcast %cst_54 : f32 to vector<16x64xf32>
    %141 = arith.mulf %132, %140 : vector<16x64xf32>
    %142 = math.absf %141 : vector<16x64xf32>
    %cst_55 = arith.constant 0.327591091 : f32
    %143 = vector.broadcast %cst_55 : f32 to vector<16x64xf32>
    %144 = arith.mulf %143, %142 : vector<16x64xf32>
    %cst_56 = arith.constant 1.000000e+00 : f32
    %145 = vector.broadcast %cst_56 : f32 to vector<16x64xf32>
    %146 = arith.addf %145, %144 : vector<16x64xf32>
    %147 = tpu.reciprocal %146 {approx = true} : vector<16x64xf32> -> vector<16x64xf32>
    %cst_57 = arith.constant 1.06140542 : f32
    %148 = vector.broadcast %cst_57 : f32 to vector<16x64xf32>
    %149 = arith.mulf %148, %147 : vector<16x64xf32>
    %cst_58 = arith.constant -1.45315206 : f32
    %150 = vector.broadcast %cst_58 : f32 to vector<16x64xf32>
    %151 = arith.addf %149, %150 : vector<16x64xf32>
    %152 = arith.mulf %151, %147 : vector<16x64xf32>
    %cst_59 = arith.constant 1.42141378 : f32
    %153 = vector.broadcast %cst_59 : f32 to vector<16x64xf32>
    %154 = arith.addf %152, %153 : vector<16x64xf32>
    %155 = arith.mulf %154, %147 : vector<16x64xf32>
    %cst_60 = arith.constant -0.284496725 : f32
    %156 = vector.broadcast %cst_60 : f32 to vector<16x64xf32>
    %157 = arith.addf %155, %156 : vector<16x64xf32>
    %158 = arith.mulf %157, %147 : vector<16x64xf32>
    %cst_61 = arith.constant 0.254829586 : f32
    %159 = vector.broadcast %cst_61 : f32 to vector<16x64xf32>
    %160 = arith.addf %158, %159 : vector<16x64xf32>
    %161 = arith.mulf %160, %147 : vector<16x64xf32>
    %cst_62 = arith.constant 0.000000e+00 : f32
    %162 = vector.broadcast %cst_62 : f32 to vector<16x64xf32>
    %163 = arith.subf %162, %142 : vector<16x64xf32>
    %164 = arith.mulf %163, %142 : vector<16x64xf32>
    %165 = math.exp %164 : vector<16x64xf32>
    %166 = arith.mulf %161, %165 : vector<16x64xf32>
    %cst_63 = arith.constant 1.000000e+00 : f32
    %167 = vector.broadcast %cst_63 : f32 to vector<16x64xf32>
    %168 = arith.subf %167, %166 : vector<16x64xf32>
    %cst_64 = arith.constant 0.000000e+00 : f32
    %169 = vector.broadcast %cst_64 : f32 to vector<16x64xf32>
    %170 = arith.cmpf oge, %141, %169 : vector<16x64xf32>
    %cst_65 = arith.constant 0.000000e+00 : f32
    %171 = vector.broadcast %cst_65 : f32 to vector<16x64xf32>
    %172 = arith.subf %171, %168 : vector<16x64xf32>
    %173 = arith.select %170, %168, %172 : vector<16x64xi1>, vector<16x64xf32>
    %cst_66 = arith.constant 1.000000e+00 : f32
    %174 = vector.broadcast %cst_66 : f32 to vector<16x64xf32>
    %175 = arith.addf %174, %173 : vector<16x64xf32>
    %176 = arith.mulf %139, %175 : vector<16x64xf32>
    %177 = arith.mulf %176, %137 : vector<16x64xf32>
    %c632 = arith.constant 632 : index
    %c0_67 = arith.constant 0 : index
    %178 = vector.load %arg1[%c632, %c0_67] : memref<1048x128xf32, #tpu.memory_space<vmem>>, vector<64x32xf32>
    %cst_68 = arith.constant dense<0.000000e+00> : vector<16x32xf32>
    %179 = tpu.matmul %177, %178, %cst_68 {dimension_numbers = #tpu.dot_dimension_numbers<[1], [0], [0], [1], [0, 0, 1, 1], [], []>} : vector<16x64xf32>, vector<64x32xf32>, vector<16x32xf32> -> vector<16x32xf32>
    %180 = arith.addf %101, %179 : vector<16x32xf32>
    %c696 = arith.constant 696 : index
    %c0_69 = arith.constant 0 : index
    %181 = vector.load %arg1[%c696, %c0_69] : memref<1048x128xf32, #tpu.memory_space<vmem>>, vector<1x32xf32>
    %182 = vector.broadcast %181 : vector<1x32xf32> to vector<16x32xf32>
    %183 = arith.addf %180, %182 : vector<16x32xf32>
    %c704 = arith.constant 704 : index
    %c0_70 = arith.constant 0 : index
    %184 = vector.load %arg1[%c704, %c0_70] : memref<1048x128xf32, #tpu.memory_space<vmem>>, vector<1x32xf32>
    %c712 = arith.constant 712 : index
    %c0_71 = arith.constant 0 : index
    %185 = vector.load %arg1[%c712, %c0_71] : memref<1048x128xf32, #tpu.memory_space<vmem>>, vector<1x32xf32>
    %cst_72 = arith.constant dense<0.000000e+00> : vector<16xf32>
    %186 = vector.multi_reduction <add>, %183, %cst_72 [1] : vector<16x32xf32> to vector<16xf32>
    %187 = vector.shape_cast %186 : vector<16xf32> to vector<16x1xf32>
    %cst_73 = arith.constant 3.200000e+01 : f32
    %188 = vector.broadcast %cst_73 : f32 to vector<16x1xf32>
    %189 = arith.divf %187, %188 : vector<16x1xf32>
    %190 = vector.broadcast %189 : vector<16x1xf32> to vector<16x32xf32>
    %191 = arith.subf %183, %190 : vector<16x32xf32>
    %192 = vector.broadcast %189 : vector<16x1xf32> to vector<16x32xf32>
    %193 = arith.subf %183, %192 : vector<16x32xf32>
    %194 = arith.mulf %191, %193 : vector<16x32xf32>
    %cst_74 = arith.constant dense<0.000000e+00> : vector<16xf32>
    %195 = vector.multi_reduction <add>, %194, %cst_74 [1] : vector<16x32xf32> to vector<16xf32>
    %196 = vector.shape_cast %195 : vector<16xf32> to vector<16x1xf32>
    %cst_75 = arith.constant 3.200000e+01 : f32
    %197 = vector.broadcast %cst_75 : f32 to vector<16x1xf32>
    %198 = arith.divf %196, %197 : vector<16x1xf32>
    %199 = vector.broadcast %189 : vector<16x1xf32> to vector<16x32xf32>
    %200 = arith.subf %183, %199 : vector<16x32xf32>
    %cst_76 = arith.constant 9.99999974E-6 : f32
    %201 = vector.broadcast %cst_76 : f32 to vector<16x1xf32>
    %202 = arith.addf %198, %201 : vector<16x1xf32>
    %203 = math.rsqrt %202 : vector<16x1xf32>
    %204 = vector.broadcast %203 : vector<16x1xf32> to vector<16x32xf32>
    %205 = arith.mulf %200, %204 : vector<16x32xf32>
    %206 = vector.broadcast %184 : vector<1x32xf32> to vector<16x32xf32>
    %207 = arith.mulf %205, %206 : vector<16x32xf32>
    %208 = vector.broadcast %185 : vector<1x32xf32> to vector<16x32xf32>
    %209 = arith.addf %207, %208 : vector<16x32xf32>
    %c720 = arith.constant 720 : index
    %c0_77 = arith.constant 0 : index
    %210 = vector.load %arg1[%c720, %c0_77] : memref<1048x128xf32, #tpu.memory_space<vmem>>, vector<32x32xf32>
    %cst_78 = arith.constant dense<0.000000e+00> : vector<16x32xf32>
    %211 = tpu.matmul %209, %210, %cst_78 {dimension_numbers = #tpu.dot_dimension_numbers<[1], [0], [0], [1], [0, 0, 1, 1], [], []>} : vector<16x32xf32>, vector<32x32xf32>, vector<16x32xf32> -> vector<16x32xf32>
    %c752 = arith.constant 752 : index
    %c0_79 = arith.constant 0 : index
    %212 = vector.load %arg1[%c752, %c0_79] : memref<1048x128xf32, #tpu.memory_space<vmem>>, vector<1x32xf32>
    %213 = vector.broadcast %212 : vector<1x32xf32> to vector<16x32xf32>
    %214 = arith.addf %211, %213 : vector<16x32xf32>
    %c760 = arith.constant 760 : index
    %c0_80 = arith.constant 0 : index
    %215 = vector.load %arg1[%c760, %c0_80] : memref<1048x128xf32, #tpu.memory_space<vmem>>, vector<32x32xf32>
    %cst_81 = arith.constant dense<0.000000e+00> : vector<16x32xf32>
    %216 = tpu.matmul %209, %215, %cst_81 {dimension_numbers = #tpu.dot_dimension_numbers<[1], [0], [0], [1], [0, 0, 1, 1], [], []>} : vector<16x32xf32>, vector<32x32xf32>, vector<16x32xf32> -> vector<16x32xf32>
    %c792 = arith.constant 792 : index
    %c0_82 = arith.constant 0 : index
    %217 = vector.load %arg1[%c792, %c0_82] : memref<1048x128xf32, #tpu.memory_space<vmem>>, vector<1x32xf32>
    %218 = vector.broadcast %217 : vector<1x32xf32> to vector<16x32xf32>
    %219 = arith.addf %216, %218 : vector<16x32xf32>
    %c800 = arith.constant 800 : index
    %c0_83 = arith.constant 0 : index
    %220 = vector.load %arg1[%c800, %c0_83] : memref<1048x128xf32, #tpu.memory_space<vmem>>, vector<32x32xf32>
    %cst_84 = arith.constant dense<0.000000e+00> : vector<16x32xf32>
    %221 = tpu.matmul %209, %220, %cst_84 {dimension_numbers = #tpu.dot_dimension_numbers<[1], [0], [0], [1], [0, 0, 1, 1], [], []>} : vector<16x32xf32>, vector<32x32xf32>, vector<16x32xf32> -> vector<16x32xf32>
    %c832 = arith.constant 832 : index
    %c0_85 = arith.constant 0 : index
    %222 = vector.load %arg1[%c832, %c0_85] : memref<1048x128xf32, #tpu.memory_space<vmem>>, vector<1x32xf32>
    %223 = vector.broadcast %222 : vector<1x32xf32> to vector<16x32xf32>
    %224 = arith.addf %221, %223 : vector<16x32xf32>
    %cst_86 = arith.constant dense<0.000000e+00> : vector<64x32xf32>
    %225 = tpu.matmul %1, %219, %cst_86 {dimension_numbers = #tpu.dot_dimension_numbers<[1], [0], [0], [1], [0, 0, 1, 1], [], []>} : vector<64x16xf32>, vector<16x32xf32>, vector<64x32xf32> -> vector<64x32xf32>
    %226 = arith.mulf %225, %0 : vector<64x32xf32>
    %cst_87 = arith.constant dense<0.000000e+00> : vector<64x32xf32>
    %227 = tpu.matmul %1, %224, %cst_87 {dimension_numbers = #tpu.dot_dimension_numbers<[1], [0], [0], [1], [0, 0, 1, 1], [], []>} : vector<64x16xf32>, vector<16x32xf32>, vector<64x32xf32> -> vector<64x32xf32>
    %228 = arith.mulf %227, %0 : vector<64x32xf32>
    %cst_88 = arith.constant dense<0.000000e+00> : vector<16x64xf32>
    %229 = tpu.matmul %214, %226, %cst_88 {dimension_numbers = #tpu.dot_dimension_numbers<[1], [1], [0], [0], [0, 0, 1, 0], [], []>} : vector<16x32xf32>, vector<64x32xf32>, vector<16x64xf32> -> vector<16x64xf32>
    %cst_89 = arith.constant dense<0xFF800000> : vector<16xf32>
    %230 = vector.multi_reduction <maximumf>, %229, %cst_89 [1] : vector<16x64xf32> to vector<16xf32>
    %231 = vector.shape_cast %230 : vector<16xf32> to vector<16x1xf32>
    %232 = vector.broadcast %231 : vector<16x1xf32> to vector<16x64xf32>
    %233 = arith.subf %229, %232 : vector<16x64xf32>
    %234 = math.exp %233 : vector<16x64xf32>
    %235 = arith.mulf %234, %2 : vector<16x64xf32>
    %cst_90 = arith.constant dense<0.000000e+00> : vector<16x64xf32>
    %236 = tpu.matmul %235, %4, %cst_90 {dimension_numbers = #tpu.dot_dimension_numbers<[1], [0], [0], [1], [0, 0, 1, 1], [], []>} : vector<16x64xf32>, vector<64x64xf32>, vector<16x64xf32> -> vector<16x64xf32>
    %237 = arith.addf %236, %3 : vector<16x64xf32>
    %238 = tpu.reciprocal %237 {approx = true} : vector<16x64xf32> -> vector<16x64xf32>
    %239 = arith.mulf %235, %238 : vector<16x64xf32>
    %cst_91 = arith.constant dense<0.000000e+00> : vector<16x32xf32>
    %240 = tpu.matmul %239, %228, %cst_91 {dimension_numbers = #tpu.dot_dimension_numbers<[1], [0], [0], [1], [0, 0, 1, 1], [], []>} : vector<16x64xf32>, vector<64x32xf32>, vector<16x32xf32> -> vector<16x32xf32>
    %c840 = arith.constant 840 : index
    %c0_92 = arith.constant 0 : index
    %241 = vector.load %arg1[%c840, %c0_92] : memref<1048x128xf32, #tpu.memory_space<vmem>>, vector<32x32xf32>
    %cst_93 = arith.constant dense<0.000000e+00> : vector<16x32xf32>
    %242 = tpu.matmul %240, %241, %cst_93 {dimension_numbers = #tpu.dot_dimension_numbers<[1], [0], [0], [1], [0, 0, 1, 1], [], []>} : vector<16x32xf32>, vector<32x32xf32>, vector<16x32xf32> -> vector<16x32xf32>
    %243 = arith.addf %183, %242 : vector<16x32xf32>
    %c872 = arith.constant 872 : index
    %c0_94 = arith.constant 0 : index
    %244 = vector.load %arg1[%c872, %c0_94] : memref<1048x128xf32, #tpu.memory_space<vmem>>, vector<1x32xf32>
    %245 = vector.broadcast %244 : vector<1x32xf32> to vector<16x32xf32>
    %246 = arith.addf %243, %245 : vector<16x32xf32>
    %c880 = arith.constant 880 : index
    %c0_95 = arith.constant 0 : index
    %247 = vector.load %arg1[%c880, %c0_95] : memref<1048x128xf32, #tpu.memory_space<vmem>>, vector<1x32xf32>
    %c888 = arith.constant 888 : index
    %c0_96 = arith.constant 0 : index
    %248 = vector.load %arg1[%c888, %c0_96] : memref<1048x128xf32, #tpu.memory_space<vmem>>, vector<1x32xf32>
    %cst_97 = arith.constant dense<0.000000e+00> : vector<16xf32>
    %249 = vector.multi_reduction <add>, %246, %cst_97 [1] : vector<16x32xf32> to vector<16xf32>
    %250 = vector.shape_cast %249 : vector<16xf32> to vector<16x1xf32>
    %cst_98 = arith.constant 3.200000e+01 : f32
    %251 = vector.broadcast %cst_98 : f32 to vector<16x1xf32>
    %252 = arith.divf %250, %251 : vector<16x1xf32>
    %253 = vector.broadcast %252 : vector<16x1xf32> to vector<16x32xf32>
    %254 = arith.subf %246, %253 : vector<16x32xf32>
    %255 = vector.broadcast %252 : vector<16x1xf32> to vector<16x32xf32>
    %256 = arith.subf %246, %255 : vector<16x32xf32>
    %257 = arith.mulf %254, %256 : vector<16x32xf32>
    %cst_99 = arith.constant dense<0.000000e+00> : vector<16xf32>
    %258 = vector.multi_reduction <add>, %257, %cst_99 [1] : vector<16x32xf32> to vector<16xf32>
    %259 = vector.shape_cast %258 : vector<16xf32> to vector<16x1xf32>
    %cst_100 = arith.constant 3.200000e+01 : f32
    %260 = vector.broadcast %cst_100 : f32 to vector<16x1xf32>
    %261 = arith.divf %259, %260 : vector<16x1xf32>
    %262 = vector.broadcast %252 : vector<16x1xf32> to vector<16x32xf32>
    %263 = arith.subf %246, %262 : vector<16x32xf32>
    %cst_101 = arith.constant 9.99999974E-6 : f32
    %264 = vector.broadcast %cst_101 : f32 to vector<16x1xf32>
    %265 = arith.addf %261, %264 : vector<16x1xf32>
    %266 = math.rsqrt %265 : vector<16x1xf32>
    %267 = vector.broadcast %266 : vector<16x1xf32> to vector<16x32xf32>
    %268 = arith.mulf %263, %267 : vector<16x32xf32>
    %269 = vector.broadcast %247 : vector<1x32xf32> to vector<16x32xf32>
    %270 = arith.mulf %268, %269 : vector<16x32xf32>
    %271 = vector.broadcast %248 : vector<1x32xf32> to vector<16x32xf32>
    %272 = arith.addf %270, %271 : vector<16x32xf32>
    %c896 = arith.constant 896 : index
    %c0_102 = arith.constant 0 : index
    %273 = vector.load %arg1[%c896, %c0_102] : memref<1048x128xf32, #tpu.memory_space<vmem>>, vector<32x64xf32>
    %cst_103 = arith.constant dense<0.000000e+00> : vector<16x64xf32>
    %274 = tpu.matmul %272, %273, %cst_103 {dimension_numbers = #tpu.dot_dimension_numbers<[1], [0], [0], [1], [0, 0, 1, 1], [], []>} : vector<16x32xf32>, vector<32x64xf32>, vector<16x64xf32> -> vector<16x64xf32>
    %c928 = arith.constant 928 : index
    %c0_104 = arith.constant 0 : index
    %275 = vector.load %arg1[%c928, %c0_104] : memref<1048x128xf32, #tpu.memory_space<vmem>>, vector<1x64xf32>
    %276 = vector.broadcast %275 : vector<1x64xf32> to vector<16x64xf32>
    %277 = arith.addf %274, %276 : vector<16x64xf32>
    %c936 = arith.constant 936 : index
    %c0_105 = arith.constant 0 : index
    %278 = vector.load %arg1[%c936, %c0_105] : memref<1048x128xf32, #tpu.memory_space<vmem>>, vector<32x64xf32>
    %cst_106 = arith.constant dense<0.000000e+00> : vector<16x64xf32>
    %279 = tpu.matmul %272, %278, %cst_106 {dimension_numbers = #tpu.dot_dimension_numbers<[1], [0], [0], [1], [0, 0, 1, 1], [], []>} : vector<16x32xf32>, vector<32x64xf32>, vector<16x64xf32> -> vector<16x64xf32>
    %c968 = arith.constant 968 : index
    %c0_107 = arith.constant 0 : index
    %280 = vector.load %arg1[%c968, %c0_107] : memref<1048x128xf32, #tpu.memory_space<vmem>>, vector<1x64xf32>
    %281 = vector.broadcast %280 : vector<1x64xf32> to vector<16x64xf32>
    %282 = arith.addf %279, %281 : vector<16x64xf32>
    %cst_108 = arith.constant 5.000000e-01 : f32
    %283 = vector.broadcast %cst_108 : f32 to vector<16x64xf32>
    %284 = arith.mulf %283, %277 : vector<16x64xf32>
    %cst_109 = arith.constant 0.707106769 : f32
    %285 = vector.broadcast %cst_109 : f32 to vector<16x64xf32>
    %286 = arith.mulf %277, %285 : vector<16x64xf32>
    %287 = math.absf %286 : vector<16x64xf32>
    %cst_110 = arith.constant 0.327591091 : f32
    %288 = vector.broadcast %cst_110 : f32 to vector<16x64xf32>
    %289 = arith.mulf %288, %287 : vector<16x64xf32>
    %cst_111 = arith.constant 1.000000e+00 : f32
    %290 = vector.broadcast %cst_111 : f32 to vector<16x64xf32>
    %291 = arith.addf %290, %289 : vector<16x64xf32>
    %292 = tpu.reciprocal %291 {approx = true} : vector<16x64xf32> -> vector<16x64xf32>
    %cst_112 = arith.constant 1.06140542 : f32
    %293 = vector.broadcast %cst_112 : f32 to vector<16x64xf32>
    %294 = arith.mulf %293, %292 : vector<16x64xf32>
    %cst_113 = arith.constant -1.45315206 : f32
    %295 = vector.broadcast %cst_113 : f32 to vector<16x64xf32>
    %296 = arith.addf %294, %295 : vector<16x64xf32>
    %297 = arith.mulf %296, %292 : vector<16x64xf32>
    %cst_114 = arith.constant 1.42141378 : f32
    %298 = vector.broadcast %cst_114 : f32 to vector<16x64xf32>
    %299 = arith.addf %297, %298 : vector<16x64xf32>
    %300 = arith.mulf %299, %292 : vector<16x64xf32>
    %cst_115 = arith.constant -0.284496725 : f32
    %301 = vector.broadcast %cst_115 : f32 to vector<16x64xf32>
    %302 = arith.addf %300, %301 : vector<16x64xf32>
    %303 = arith.mulf %302, %292 : vector<16x64xf32>
    %cst_116 = arith.constant 0.254829586 : f32
    %304 = vector.broadcast %cst_116 : f32 to vector<16x64xf32>
    %305 = arith.addf %303, %304 : vector<16x64xf32>
    %306 = arith.mulf %305, %292 : vector<16x64xf32>
    %cst_117 = arith.constant 0.000000e+00 : f32
    %307 = vector.broadcast %cst_117 : f32 to vector<16x64xf32>
    %308 = arith.subf %307, %287 : vector<16x64xf32>
    %309 = arith.mulf %308, %287 : vector<16x64xf32>
    %310 = math.exp %309 : vector<16x64xf32>
    %311 = arith.mulf %306, %310 : vector<16x64xf32>
    %cst_118 = arith.constant 1.000000e+00 : f32
    %312 = vector.broadcast %cst_118 : f32 to vector<16x64xf32>
    %313 = arith.subf %312, %311 : vector<16x64xf32>
    %cst_119 = arith.constant 0.000000e+00 : f32
    %314 = vector.broadcast %cst_119 : f32 to vector<16x64xf32>
    %315 = arith.cmpf oge, %286, %314 : vector<16x64xf32>
    %cst_120 = arith.constant 0.000000e+00 : f32
    %316 = vector.broadcast %cst_120 : f32 to vector<16x64xf32>
    %317 = arith.subf %316, %313 : vector<16x64xf32>
    %318 = arith.select %315, %313, %317 : vector<16x64xi1>, vector<16x64xf32>
    %cst_121 = arith.constant 1.000000e+00 : f32
    %319 = vector.broadcast %cst_121 : f32 to vector<16x64xf32>
    %320 = arith.addf %319, %318 : vector<16x64xf32>
    %321 = arith.mulf %284, %320 : vector<16x64xf32>
    %322 = arith.mulf %321, %282 : vector<16x64xf32>
    %c976 = arith.constant 976 : index
    %c0_122 = arith.constant 0 : index
    %323 = vector.load %arg1[%c976, %c0_122] : memref<1048x128xf32, #tpu.memory_space<vmem>>, vector<64x32xf32>
    %cst_123 = arith.constant dense<0.000000e+00> : vector<16x32xf32>
    %324 = tpu.matmul %322, %323, %cst_123 {dimension_numbers = #tpu.dot_dimension_numbers<[1], [0], [0], [1], [0, 0, 1, 1], [], []>} : vector<16x64xf32>, vector<64x32xf32>, vector<16x32xf32> -> vector<16x32xf32>
    %325 = arith.addf %246, %324 : vector<16x32xf32>
    %c1040 = arith.constant 1040 : index
    %c0_124 = arith.constant 0 : index
    %326 = vector.load %arg1[%c1040, %c0_124] : memref<1048x128xf32, #tpu.memory_space<vmem>>, vector<1x32xf32>
    %327 = vector.broadcast %326 : vector<1x32xf32> to vector<16x32xf32>
    %328 = arith.addf %325, %327 : vector<16x32xf32>
    %c80 = arith.constant 80 : index
    %c0_125 = arith.constant 0 : index
    %329 = vector.load %arg1[%c80, %c0_125] : memref<1048x128xf32, #tpu.memory_space<vmem>>, vector<1x32xf32>
    %c88 = arith.constant 88 : index
    %c0_126 = arith.constant 0 : index
    %330 = vector.load %arg1[%c88, %c0_126] : memref<1048x128xf32, #tpu.memory_space<vmem>>, vector<1x32xf32>
    %cst_127 = arith.constant dense<0.000000e+00> : vector<16xf32>
    %331 = vector.multi_reduction <add>, %328, %cst_127 [1] : vector<16x32xf32> to vector<16xf32>
    %332 = vector.shape_cast %331 : vector<16xf32> to vector<16x1xf32>
    %cst_128 = arith.constant 3.200000e+01 : f32
    %333 = vector.broadcast %cst_128 : f32 to vector<16x1xf32>
    %334 = arith.divf %332, %333 : vector<16x1xf32>
    %335 = vector.broadcast %334 : vector<16x1xf32> to vector<16x32xf32>
    %336 = arith.subf %328, %335 : vector<16x32xf32>
    %337 = vector.broadcast %334 : vector<16x1xf32> to vector<16x32xf32>
    %338 = arith.subf %328, %337 : vector<16x32xf32>
    %339 = arith.mulf %336, %338 : vector<16x32xf32>
    %cst_129 = arith.constant dense<0.000000e+00> : vector<16xf32>
    %340 = vector.multi_reduction <add>, %339, %cst_129 [1] : vector<16x32xf32> to vector<16xf32>
    %341 = vector.shape_cast %340 : vector<16xf32> to vector<16x1xf32>
    %cst_130 = arith.constant 3.200000e+01 : f32
    %342 = vector.broadcast %cst_130 : f32 to vector<16x1xf32>
    %343 = arith.divf %341, %342 : vector<16x1xf32>
    %344 = vector.broadcast %334 : vector<16x1xf32> to vector<16x32xf32>
    %345 = arith.subf %328, %344 : vector<16x32xf32>
    %cst_131 = arith.constant 9.99999974E-6 : f32
    %346 = vector.broadcast %cst_131 : f32 to vector<16x1xf32>
    %347 = arith.addf %343, %346 : vector<16x1xf32>
    %348 = math.rsqrt %347 : vector<16x1xf32>
    %349 = vector.broadcast %348 : vector<16x1xf32> to vector<16x32xf32>
    %350 = arith.mulf %345, %349 : vector<16x32xf32>
    %351 = vector.broadcast %329 : vector<1x32xf32> to vector<16x32xf32>
    %352 = arith.mulf %350, %351 : vector<16x32xf32>
    %353 = vector.broadcast %330 : vector<1x32xf32> to vector<16x32xf32>
    %354 = arith.addf %352, %353 : vector<16x32xf32>
    %c96 = arith.constant 96 : index
    %c0_132 = arith.constant 0 : index
    %355 = vector.load %arg1[%c96, %c0_132] : memref<1048x128xf32, #tpu.memory_space<vmem>>, vector<32x128xf32>
    %cst_133 = arith.constant dense<0.000000e+00> : vector<16x128xf32>
    %356 = tpu.matmul %354, %355, %cst_133 {dimension_numbers = #tpu.dot_dimension_numbers<[1], [0], [0], [1], [0, 0, 1, 1], [], []>} : vector<16x32xf32>, vector<32x128xf32>, vector<16x128xf32> -> vector<16x128xf32>
    %c128 = arith.constant 128 : index
    %c0_134 = arith.constant 0 : index
    %357 = vector.load %arg1[%c128, %c0_134] : memref<1048x128xf32, #tpu.memory_space<vmem>>, vector<1x128xf32>
    %358 = vector.broadcast %357 : vector<1x128xf32> to vector<16x128xf32>
    %359 = arith.addf %356, %358 : vector<16x128xf32>
    %c0_135 = arith.constant 0 : index
    %c0_136 = arith.constant 0 : index
    %360 = vector.load %arg2[%c0_135, %c0_136] : memref<16x128xf32, #tpu.memory_space<vmem>>, vector<16x128xf32>
    tpu.vector_store %arg2[%c0_135, %c0_136], %359 {strides = array<i32>} : memref<16x128xf32, #tpu.memory_space<vmem>>, vector<16x128xf32>,
    %361 = tpu.concatenate %94, %239 in 1 : vector<16x64xf32>, vector<16x64xf32> -> vector<16x128xf32>
    %c0_137 = arith.constant 0 : index
    %c0_138 = arith.constant 0 : index
    %362 = vector.load %arg3[%c0_137, %c0_138] : memref<16x128xf32, #tpu.memory_space<vmem>>, vector<16x128xf32>
    tpu.vector_store %arg3[%c0_137, %c0_138], %361 {strides = array<i32>} : memref<16x128xf32, #tpu.memory_space<vmem>>, vector<16x128xf32>,
    return
  }
}

</mosaic_0001>

<bundles_post_ra>
// kernel: transformer_model_forward.1
= control target key start
LH: loop header
LB: loop body
LE: loop exit
PB: predicated region body
PF: predicated region fallthrough
CT: control target
= control target key end

     0   :  { %9 = vsyncpa [#allocation3], 0  ;;  %s3709_s12 = smov [#allocation2]   ;;  %s4116_s0 = inlined_call_operand.vmem [shape: s32[16,1], index: 0, kind: input, shape index: {}]   ;;  %s4117_s1 = inlined_call_operand.hbm [shape: f32[1048,128], index: 1, kind: input, shape index: {}]   ;;  %s4118_s2 = inlined_call_operand.vmem [shape: f32[16,128], index: 2, kind: output, shape index: {0}]   ;;  %s4119_s3 = inlined_call_operand.vmem [shape: f32[16,128], index: 3, kind: output, shape index: {1}]  }
   0x1   :  { %s17_s13 = sshll.u32 %s3709_s12, 4  ;;  %s18_s13 = int_to_ptr.vmem [resolvable:$true] %s17_s13 }
   0x2   :  { %s3695_s14 = scalar_lea.vmem %s18_s13, 16768  ;;  %p3700_p1 = scmp.lt.s32.totalorder %s18_s13, %s18_s13 }
   0x3   :  { %p3696_p0 = scmp.ne.s32.totalorder %s18_s13, %s3695_s14  ;;  %p3701_p2 = scmp.lt.s32.totalorder %s3695_s14, %s3695_s14 }
   0x5   :  { %p3702_p3 = por %p3701_p2, %p3700_p1 }
   0x7   :  { %p3703_p4 = pnand %p3702_p3, %p3696_p0 }
   0x9   :  { %3706 = shalt.err (!%p3703_p4)
}
   0xa   :  { %s3710_s15 = smov 128   ;;  %s3711_s16 = smov 8  }
   0xb   :  { %23 = dma.hbm_to_vmem [thread:$0]  %s4117_s1, 16768, %s18_s13, [#allocation3], %s3710_s15, %s3710_s15, %s3711_s16  }
   0xc   :  { %3707 = dma.done.wait [#allocation3], 16768  }
   0xd   :  { %3708 = vsyncadd [#allocation3], 4294950528  ;;  %v3712_v0 = vmov 0   ;;  %v55_v1 = vld [vmem:[%s4116_s0] sm:$0xff]  ;;  %v78_v2 = vld [vmem:[#allocation2 + $0x38] sm:$0xff]  ;;  %v57_v11 = vlaneseq  ;;  %vm79_vm0 = vcmask 523264  }
   0xe   :  { %3630 = vset.pattern.permute.xlu0 %v3712_v0  ;;  %3246 = vmatprep.subr.mxu0 %v78_v2  ;;  %v77_v3 = vld [vmem:[#allocation2 + $0x30] sm:$0xff]  ;;  %v56_v4 = vld [vmem:[%s4116_s0 + $0x8] sm:$0xff]  ;;  %v75_v6 = vld [vmem:[#allocation2 + $0x20] sm:$0xff]  ;;  %v3713_v14 = vmov 0.0   ;;  %vm163_vm3 = vcmask 261120   ;;  %vm501_vm4 = vcmask 130048  }
   0xf   :  { %60 = vperm.xlu0 %3630, %v55_v1   ;;  %3247 = vmatpush3.msra.mxu0 %v78_v2  ;;  %v76_v5 = vld [vmem:[#allocation2 + $0x28] sm:$0xff]  ;;  %v74_v7 = vld [vmem:[#allocation2 + $0x18] sm:$0xff]  ;;  %v73_v8 = vld [vmem:[#allocation2 + $0x10] sm:$0xff]  ;;  %v58_v12 = vand.u32 127, %v57_v11  ;;  %s3714_s0 = smov 64  }
  0x10   :  { %3248 = vmatprep.subr.mxu0 %v77_v3  ;;  %v72_v9 = vld [vmem:[#allocation2 + $0x8] sm:$0xff]  ;;  %v71_v10 = vld [vmem:[#allocation2] sm:$0xff]  ;;  %v246_v60 = vld [vmem:[#allocation2 + $0x190] sm:$0xff] }
  0x11   :  { %3249 = vmatpush3.msra.mxu0 %v77_v3  ;;  %v2921_v39 = vld [vmem:[#allocation2 + $0x40] ss:$0 sm:$0xff]  ;;  %v2922_v41 = vld [vmem:[#allocation2 + $0x48] ss:$0 sm:$0xff]  ;;  %3265 = vmatprep.subr.mxu1 %v246_v60  ;;  %v419_v63 = vld [vmem:[#allocation2 + $0x1d8] sm:$0xff] }
  0x12   :  { %3250 = vmatprep.subr.mxu0 %v76_v5  ;;  %v420_v61 = vld [vmem:[#allocation2 + $0x1e0] sm:$0xff]  ;;  %v245_v62 = vld [vmem:[#allocation2 + $0x188] sm:$0xff]  ;;  %3266 = vmatpush3.msra.mxu1 %v246_v60  ;;  %v418_v1 = vld [vmem:[#allocation2 + $0x1d0] sm:$0xff] }
  0x13   :  { %63 = vperm.xlu0 %3630, %v56_v4   ;;  %3251 = vmatpush3.msra.mxu0 %v76_v5  ;;  %v244_v0 = vld [vmem:[#allocation2 + $0x180] sm:$0xff]  ;;  %v243_v2 = vld [vmem:[#allocation2 + $0x178] sm:$0xff]  ;;  %v417_v3 = vld [vmem:[#allocation2 + $0x1c8] sm:$0xff] }
  0x14   :  { %3252 = vmatprep.subr.mxu0 %v75_v6  ;;  %3267 = vmatprep.subr.mxu1 %v245_v62  ;;  %v336_v4 = vld [vmem:[#allocation2 + $0x1b8] sm:$0xff] }
  0x15   :  { %3253 = vmatpush3.msra.mxu0 %v75_v6  ;;  %3268 = vmatpush3.msra.mxu1 %v245_v62 }
  0x16   :  { %3254 = vmatprep.subr.mxu0 %v74_v7  ;;  %3269 = vmatprep.subr.mxu1 %v244_v0 }
  0x17   :  { %3255 = vmatpush3.msra.mxu0 %v74_v7  ;;  %3270 = vmatpush3.msra.mxu1 %v244_v0 }
  0x18   :  { %3256 = vmatprep.subr.mxu0 %v73_v8  ;;  %3271 = vmatprep.subr.mxu1 %v243_v2 }
  0x19   :  { %3257 = vmatpush3.msra.mxu0 %v73_v8  ;;  %3272 = vmatpush3.msra.mxu1 %v243_v2 }
  0x1a   :  { %3258 = vmatprep.subr.mxu0 %v72_v9  ;;  %3276 = vmatprep.subr.mxu1 %v336_v4 }
  0x1b   :  { %3259 = vmatpush3.msra.mxu0 %v72_v9 }
  0x1c   :  { %3260 = vmatprep.subr.mxu0 %v71_v10 }
  0x1d   :  { %3261 = vmatpush3.msra.mxu0 %v71_v10 }
  0x1e   :  { %3287 = vmatprep.subr.mxu0 %v420_v61 }
  0x8a   :  { %v61_v13 = vpop.permute.xlu0 %60 }
  0x8b   :  { %vm65_vm1 = vcmp.eq.s32.totalorder %v61_v13, %v58_v12 }
  0x8c   :  { %v2917_v15 = vsel %vm65_vm1, 1.0, %v3713_v14 }
  0x8d   :  { %3262 = vmatprep.mubr.msk.f32.mxu0 %vm79_vm0, %v2917_v15 }
  0x8e   :  { %v64_v16 = vpop.permute.xlu0 %63 }
  0x8f   :  { %vm66_vm2 = vcmp.eq.s32.totalorder %v64_v16, %v58_v12  ;;  %v2923_v12 = vld [vmem:[#allocation2 + $0x168] ss:$0 sm:$0xff] }
  0x90   :  { %v2918_v17 = vsel %vm66_vm2, 1.0, %v3713_v14  ;;  %v2924_v14 = vld [vmem:[#allocation2 + $0x170] ss:$0 sm:$0xff] }
  0x91   :  { %3263 = vmatmul.mubr.msk.f32.vlgmr.msra.gmra.mxu0 %vm79_vm0, %v2918_v17 }
  0x92   :  { %3288 = vmatpush3.msra.mxu0 %v420_v61  ;;  %v3826_v61 = vld [vmem:[#allocation2 + $0xb0] sm:$0xff] }
  0x93   :  { %3289 = vmatprep.subr.mxu0 %v419_v63 }
  0x94   :  { %3290 = vmatpush3.msra.mxu0 %v419_v63  ;;  %v3831_v63 = vld [vmem:[#allocation2 + $0xa8] sm:$0xff] }
  0x95   :  { %3291 = vmatprep.subr.mxu0 %v418_v1 }
  0x96   :  { %3292 = vmatpush3.msra.mxu0 %v418_v1  ;;  %v3836_v1 = vld [vmem:[#allocation2 + $0xa0] sm:$0xff] }
  0x97   :  { %3293 = vmatprep.subr.mxu0 %v417_v3 }
  0x98   :  { %3294 = vmatpush3.msra.mxu0 %v417_v3  ;;  %v3841_v3 = vld [vmem:[#allocation2 + $0x98] sm:$0xff] }
 0x151   :  { %v3264_v18 = vpop.f32.mrf.mxu0 }
 0x152   :  { %v167_v21 = vsel %vm163_vm3, %v3264_v18, 0.0 }
 0x153   :  { %v152_v19 = vpop.f32.mrf.mxu0 }
 0x154   :  { %v164_v20 = vsel %vm163_vm3, %v152_v19, 0.0 }
 0x155   :  { %165 = vadd.xlane.f32.xlu1 %v164_v20 }
 0x159   :  { %168 = vadd.xlane.f32.xlu1 %v167_v21  ;;  %v335_v21 = vld [vmem:[#allocation2 + $0x1b0] sm:$0xff] }
 0x1de   :  { %v166_v22 = vpop.xlane.xlu1 %165 }
 0x1df   :  { %v171_v23 = vmul.f32 0.03125, %v166_v22  ;;  %v334_v22 = vld [vmem:[#allocation2 + $0x1a8] sm:$0xff] }
 0x1e1   :  { %v173_v24 = vsub.f32 %v152_v19, %v171_v23  ;;  %v333_v23 = vld [vmem:[#allocation2 + $0x1a0] sm:$0xff] }
 0x1e2   :  { %v169_v25 = vpop.xlane.xlu1 %168 }
 0x1e3   :  { %v172_v26 = vmul.f32 0.03125, %v169_v25  ;;  %v175_v27 = vmul.f32 %v173_v24, %v173_v24  ;;  %v2925_v25 = vld [vmem:[#allocation2 + $0x198] ss:$0 sm:$0xff] }
 0x1e5   :  { %v174_v28 = vsub.f32 %v3264_v18, %v172_v26  ;;  %v177_v29 = vsel %vm163_vm3, %v175_v27, 0.0  ;;  %v2931_v26 = vld [vmem:[#allocation2 + $0x1e8] ss:$0 sm:$0xff] }
 0x1e6   :  { %178 = vadd.xlane.f32.xlu0 %v177_v29 }
 0x1e7   :  { %v176_v30 = vmul.f32 %v174_v28, %v174_v28 }
 0x1e9   :  { %v180_v31 = vsel %vm163_vm3, %v176_v30, 0.0 }
 0x1ea   :  { %181 = vadd.xlane.f32.xlu1 %v180_v31 }
 0x26f   :  { %v179_v32 = vpop.xlane.xlu0 %178 }
 0x270   :  { %v183_v33 = vmul.f32 0.03125, %v179_v32 }
 0x272   :  { %v185_v34 = vadd.f32 1e-05, %v183_v33 }
 0x273   :  { %v182_v35 = vpop.xlane.xlu1 %181 }
 0x274   :  { %3631 = vrsqrt.f32 %v185_v34  ;;  %v184_v36 = vmul.f32 0.03125, %v182_v35  ;;  %v2928_v34 = vld [vmem:[#allocation2 + $0x1c0] ss:$0 sm:$0xff]  ;;  %v3776_v35 = vld [vmem:[#allocation2 + $0xd0] sm:$0xff] }
 0x276   :  { %v186_v37 = vadd.f32 1e-05, %v184_v36  ;;  %v3778_v36 = vld [vmem:[#allocation2 + $0xd8] sm:$0xff] }
 0x278   :  { %3633 = vrsqrt.f32 %v186_v37 }
 0x281   :  { %v3632_v38 = vpop.eup %3631 }
 0x282   :  { %v189_v40 = vmul.f32 %v3632_v38, %v173_v24  ;;  %v3768_v24 = vld [vmem:[#allocation2 + $0xc8] sm:$0xff] }
 0x284   :  { %v195_v42 = vmul.f32 %v2921_v39, %v189_v40  ;;  %v3784_v40 = vld [vmem:[#allocation2 + $0xe0] sm:$0xff] }
 0x285   :  { %v3634_v43 = vpop.eup %3633 }
 0x286   :  { %v3750_v44 = vadd.f32 %v2922_v41, %v195_v42  ;;  %v190_v45 = vmul.f32 %v3634_v43, %v174_v28  ;;  %v3786_v42 = vld [vmem:[#allocation2 + $0xe8] sm:$0xff]  ;;  %v3792_v43 = vld [vmem:[#allocation2 + $0xf0] sm:$0xff] }
 0x288   :  { %v205_v46 = vsel %vm163_vm3, %v3750_v44, 0.0  ;;  %v196_v47 = vmul.f32 %v2921_v39, %v190_v45  ;;  %v3796_v45 = vld [vmem:[#allocation2 + $0xf8] sm:$0xff] }
 0x289   :  { %206 = vadd.xlane.f32.xlu1 %v205_v46  ;;  %v3804_v46 = vld [vmem:[#allocation2 + $0x100] sm:$0xff] }
 0x28a   :  { %v3754_v48 = vadd.f32 %v2922_v41, %v196_v47 }
 0x28c   :  { %v208_v49 = vsel %vm163_vm3, %v3754_v48, 0.0 }
 0x28d   :  { %209 = vadd.xlane.f32.xlu1 %v208_v49 }
 0x312   :  { %v207_v50 = vpop.xlane.xlu1 %206 }
 0x313   :  { %v211_v51 = vmul.f32 0.03125, %v207_v50 }
 0x315   :  { %v213_v52 = vsub.f32 %v3750_v44, %v211_v51 }
 0x316   :  { %v210_v53 = vpop.xlane.xlu1 %209 }
 0x317   :  { %v212_v54 = vmul.f32 0.03125, %v210_v53  ;;  %v215_v55 = vmul.f32 %v213_v52, %v213_v52 }
 0x319   :  { %v214_v56 = vsub.f32 %v3754_v48, %v212_v54  ;;  %v217_v57 = vsel %vm163_vm3, %v215_v55, 0.0  ;;  %v3819_v55 = vld [vmem:[#allocation2 + $0xc0] sm:$0xff] }
 0x31a   :  { %218 = vadd.xlane.f32.xlu1 %v217_v57  ;;  %v3821_v57 = vld [vmem:[#allocation2 + $0xb8] sm:$0xff] }
 0x31b   :  { %v216_v58 = vmul.f32 %v214_v56, %v214_v56 }
 0x31d   :  { %v220_v59 = vsel %vm163_vm3, %v216_v58, 0.0 }
 0x31e   :  { %221 = vadd.xlane.f32.xlu1 %v220_v59 }
 0x3a3   :  { %v219_v5 = vpop.xlane.xlu1 %218 }
 0x3a4   :  { %v223_v6 = vmul.f32 0.03125, %v219_v5  ;;  %v3846_v5 = vld [vmem:[#allocation2 + $0x90] sm:$0xff] }
 0x3a6   :  { %v225_v7 = vadd.f32 1e-05, %v223_v6 }
 0x3a7   :  { %v222_v8 = vpop.xlane.xlu1 %221 }
 0x3a8   :  { %3635 = vrsqrt.f32 %v225_v7  ;;  %v224_v9 = vmul.f32 0.03125, %v222_v8  ;;  %v3851_v7 = vld [vmem:[#allocation2 + $0x88] sm:$0xff] }
 0x3aa   :  { %v226_v10 = vadd.f32 1e-05, %v224_v9 }
 0x3ac   :  { %3637 = vrsqrt.f32 %v226_v10 }
 0x3b5   :  { %v3636_v11 = vpop.eup %3635 }
 0x3b6   :  { %v229_v13 = vmul.f32 %v3636_v11, %v213_v52 }
 0x3b8   :  { %v235_v15 = vmul.f32 %v2923_v12, %v229_v13  ;;  %v3863_v13 = vld [vmem:[#allocation2 + $0x160] sm:$0xff] }
 0x3b9   :  { %v3638_v16 = vpop.eup %3637 }
 0x3ba   :  { %v230_v17 = vmul.f32 %v3638_v16, %v214_v56  ;;  %v241_v18 = vadd.f32 %v2924_v14, %v235_v15  ;;  %v3871_v15 = vld [vmem:[#allocation2 + $0x150] sm:$0xff]  ;;  %v3875_v16 = vld [vmem:[#allocation2 + $0x148] sm:$0xff] }
 0x3bc   :  { %v236_v19 = vmul.f32 %v2923_v12, %v230_v17  ;;  %3273 = vmatprep.mubr.msk.f32.mxu1 %vm163_vm3, %v241_v18  ;;  %3295 = vmatprep.mubr.msk.f32.mxu0 %vm163_vm3, %v241_v18  ;;  %v3879_v17 = vld [vmem:[#allocation2 + $0x140] sm:$0xff] }
 0x3be   :  { %v242_v20 = vadd.f32 %v2924_v14, %v236_v19  ;;  %v3867_v14 = vld [vmem:[#allocation2 + $0x158] sm:$0xff]  ;;  %v3887_v19 = vld [vmem:[#allocation2 + $0x130] sm:$0xff] }
 0x3c0   :  { %3274 = vmatmul.mubr.msk.f32.vlgmr.msra.gmra.mxu1 %vm163_vm3, %v242_v20  ;;  %3296 = vmatmul.mubr.msk.f32.vlgmr.msra.gmra.mxu0 %vm163_vm3, %v242_v20 }
 0x3c1   :  { %3277 = vmatpush3.msra.mxu1 %v336_v4  ;;  %3284 = vmatprep.mubr.msk.f32.mxu1 %vm163_vm3, %v241_v18  ;;  %v3883_v18 = vld [vmem:[#allocation2 + $0x138] sm:$0xff] }
 0x3c2   :  { %3278 = vmatprep.subr.mxu1 %v335_v21  ;;  %3318 = vmatprep.mubr.msk.f32.mxu0 %vm501_vm4, %v3768_v24 }
 0x3c3   :  { %3279 = vmatpush3.msra.mxu1 %v335_v21 }
 0x3c4   :  { %3280 = vmatprep.subr.mxu1 %v334_v22 }
 0x3c5   :  { %3281 = vmatpush3.msra.mxu1 %v334_v22 }
 0x3c6   :  { %3282 = vmatprep.subr.mxu1 %v333_v23 }
 0x3c7   :  { %3283 = vmatpush3.msra.mxu1 %v333_v23 }
 0x3c8   :  { %3285 = vmatmul.mubr.msk.f32.vlgmr.msra.gmra.mxu1 %vm163_vm3, %v242_v20  ;;  %v3891_v20 = vld [vmem:[#allocation2 + $0x128] sm:$0xff] }
 0x3c9   :  { %3302 = vmatprep.mubr.msk.f32.mxu1 %vm501_vm4, %v3768_v24 }
 0x480   :  { %v3275_v27 = vpop.f32.mrf.mxu1  ;;  %v3297_v28 = vpop.f32.mrf.mxu0 }
 0x481   :  { %v3774_v29 = vadd.f32 %v3275_v27, %v2925_v25  ;;  %v498_v30 = vadd.f32 %v3297_v28, %v2931_v26 }
 0x482   :  { %v492_v31 = vpop.f32.mrf.mxu0  ;;  %v324_v33 = vpop.f32.mrf.mxu1 }
 0x483   :  { %v493_v32 = vadd.f32 %v2931_v26, %v492_v31  ;;  %3314 = vmatprep.subr.mxu0 %v498_v30  ;;  %v325_v47 = vadd.f32 %v2925_v25, %v324_v33 }
 0x484   :  { %3315 = vmatpush3.msra.mxu0 %v498_v30 }
 0x485   :  { %3316 = vmatprep.subr.mxu0 %v493_v32 }
 0x486   :  { %3317 = vmatpush3.msra.mxu0 %v493_v32 }
 0x487   :  { %3319 = vmatmul.mubr.msk.f32.vlgmr.msra.gmra.mxu0 %vm501_vm4, %v3776_v35  ;;  %3349 = vmatprep.subr.mxu0 %v3863_v13 }
 0x488   :  { %v3286_v37 = vpop.f32.mrf.mxu1  ;;  %3321 = vmatprep.mubr.msk.f32.mxu0 %vm501_vm4, %v3778_v36  ;;  %3350 = vmatpush3.msra.mxu0 %v3863_v13 }
 0x489   :  { %v414_v38 = vadd.f32 %v3286_v37, %v2928_v34  ;;  %3351 = vmatprep.subr.mxu0 %v3867_v14 }
 0x48a   :  { %v408_v39 = vpop.f32.mrf.mxu1  ;;  %3352 = vmatpush3.msra.mxu0 %v3867_v14 }
 0x48b   :  { %v409_v41 = vadd.f32 %v2928_v34, %v408_v39  ;;  %3298 = vmatprep.subr.mxu1 %v414_v38  ;;  %3322 = vmatmul.mubr.msk.f32.gmra.mxu0 %vm501_vm4, %v3784_v40 }
 0x48c   :  { %3299 = vmatpush3.msra.mxu1 %v414_v38  ;;  %3324 = vmatprep.mubr.msk.f32.mxu0 %vm501_vm4, %v3786_v42  ;;  %v3896_v38 = vld [vmem:[#allocation2 + $0x108] sm:$0xff] }
 0x48d   :  { %3300 = vmatprep.subr.mxu1 %v409_v41  ;;  %3353 = vmatprep.subr.mxu0 %v3871_v15 }
 0x48e   :  { %3301 = vmatpush3.msra.mxu1 %v409_v41  ;;  %3354 = vmatpush3.msra.mxu0 %v3871_v15 }
 0x48f   :  { %3303 = vmatmul.mubr.msk.f32.vlgmr.msra.gmra.mxu1 %vm501_vm4, %v3776_v35  ;;  %3325 = vmatmul.mubr.msk.f32.gmra.mxu0 %vm501_vm4, %v3792_v43 }
 0x490   :  { %3305 = vmatprep.mubr.msk.f32.mxu1 %vm501_vm4, %v3778_v36  ;;  %3327 = vmatprep.mubr.msk.f32.mxu0 %vm501_vm4, %v3796_v45 }
 0x491   :  { %3355 = vmatprep.subr.mxu0 %v3875_v16 }
 0x492   :  { %3356 = vmatpush3.msra.mxu0 %v3875_v16 }
 0x493   :  { %3306 = vmatmul.mubr.msk.f32.gmra.mxu1 %vm501_vm4, %v3784_v40  ;;  %3328 = vmatmul.mubr.msk.f32.gmra.mxu0 %vm501_vm4, %v3804_v46 }
 0x494   :  { %3308 = vmatprep.mubr.msk.f32.mxu1 %vm501_vm4, %v3786_v42  ;;  %3357 = vmatprep.subr.mxu0 %v3879_v17 }
 0x495   :  { %3358 = vmatpush3.msra.mxu0 %v3879_v17 }
 0x496   :  { %3359 = vmatprep.subr.mxu0 %v3883_v18 }
 0x497   :  { %3309 = vmatmul.mubr.msk.f32.gmra.mxu1 %vm501_vm4, %v3792_v43  ;;  %3360 = vmatpush3.msra.mxu0 %v3883_v18 }
 0x498   :  { %3311 = vmatprep.mubr.msk.f32.mxu1 %vm501_vm4, %v3796_v45  ;;  %3361 = vmatprep.subr.mxu0 %v3887_v19 }
 0x499   :  { %3362 = vmatpush3.msra.mxu0 %v3887_v19 }
 0x49a   :  { %3363 = vmatprep.subr.mxu0 %v3891_v20 }
 0x49b   :  { %3312 = vmatmul.mubr.msk.f32.gmra.mxu1 %vm501_vm4, %v3804_v46  ;;  %3364 = vmatpush3.msra.mxu0 %v3891_v20 }
 0x49c   :  { %3346 = vmatprep.mubr.msk.f32.mxu1 %vm163_vm3, %v325_v47  ;;  %v3899_v47 = vld [vmem:[#allocation2 + $0x110] sm:$0xff] }
 0x547   :  { %v3320_v21 = vpop.f32.mrf.mxu0 }
 0x549   :  { %v705_v22 = vpop.f32.mrf.mxu0 }
 0x54b   :  { %v3323_v23 = vpop.f32.mrf.mxu0 }
 0x54d   :  { %v715_v25 = vpop.f32.mrf.mxu0 }
 0x54f   :  { %v3304_v49 = vpop.f32.mrf.mxu1  ;;  %v3326_v26 = vpop.f32.mrf.mxu0 }
 0x550   :  { %v632_v6 = vmul.f32 %v3304_v49, %v3846_v5 }
 0x551   :  { %v592_v50 = vpop.f32.mrf.mxu1  ;;  %v725_v27 = vpop.f32.mrf.mxu0 }
 0x552   :  { %v631_v8 = vmul.f32 %v592_v50, %v3851_v7 }
 0x553   :  { %v3307_v51 = vpop.f32.mrf.mxu1  ;;  %v3329_v28 = vpop.f32.mrf.mxu0 }
 0x554   :  { %v634_v2 = vmul.f32 %v3307_v51, %v3836_v1 }
 0x555   :  { %v602_v52 = vpop.f32.mrf.mxu1  ;;  %v735_v49 = vpop.f32.mrf.mxu0 }
 0x556   :  { %v633_v4 = vmul.f32 %v602_v52, %v3841_v3  ;;  %v750_v52 = vmul.f32 %v735_v49, %v3821_v57 }
 0x557   :  { %v3310_v53 = vpop.f32.mrf.mxu1 }
 0x558   :  { %v636_v62 = vmul.f32 %v3310_v53, %v3826_v61  ;;  %v749_v53 = vmul.f32 %v3326_v26, %v3826_v61 }
 0x559   :  { %v612_v54 = vpop.f32.mrf.mxu1 }
 0x55a   :  { %v635_v0 = vmul.f32 %v612_v54, %v3831_v63  ;;  %v748_v54 = vmul.f32 %v725_v27, %v3831_v63 }
 0x55b   :  { %v3313_v56 = vpop.f32.mrf.mxu1 }
 0x55c   :  { %v638_v58 = vmul.f32 %v3313_v56, %v3819_v55  ;;  %v747_v56 = vmul.f32 %v3323_v23, %v3836_v1  ;;  %v1038_v23 = vld [vmem:[#allocation2 + $0x1f8] sm:$0xff] }
 0x55d   :  { %v622_v59 = vpop.f32.mrf.mxu1 }
 0x55e   :  { %v637_v60 = vmul.f32 %v622_v59, %v3821_v57  ;;  %3330 = vmatprep.subr.msk.mxu1 %vm163_vm3, %v638_v58  ;;  %v745_v59 = vmul.f32 %v3320_v21, %v3846_v5 }
 0x55f   :  { %3331 = vmatpush3.xpose.msk.msra.mxu1 %vm163_vm3, %v638_v58  ;;  %v746_v58 = vmul.f32 %v715_v25, %v3841_v3  ;;  %v1037_v25 = vld [vmem:[#allocation2 + $0x1f0] sm:$0xff] }
 0x560   :  { %3332 = vmatprep.subr.msk.mxu1 %vm163_vm3, %v637_v60 }
 0x563   :  { %3333 = vmatpush3.xpose.msk.msra.mxu1 %vm163_vm3, %v637_v60  ;;  %v744_v60 = vmul.f32 %v705_v22, %v3851_v7 }
 0x564   :  { %3334 = vmatprep.subr.msk.mxu1 %vm163_vm3, %v636_v62 }
 0x567   :  { %3335 = vmatpush3.xpose.msk.msra.mxu1 %vm163_vm3, %v636_v62  ;;  %v1040_v62 = vld [vmem:[#allocation2 + $0x208] sm:$0xff] }
 0x568   :  { %3336 = vmatprep.subr.msk.mxu1 %vm163_vm3, %v635_v0 }
 0x56b   :  { %3337 = vmatpush3.xpose.msk.msra.mxu1 %vm163_vm3, %v635_v0  ;;  %v1039_v0 = vld [vmem:[#allocation2 + $0x200] sm:$0xff] }
 0x56c   :  { %3338 = vmatprep.subr.msk.mxu1 %vm163_vm3, %v634_v2 }
 0x56f   :  { %3339 = vmatpush3.xpose.msk.msra.mxu1 %vm163_vm3, %v634_v2  ;;  %v3911_v2 = vld [vmem:[#allocation2 + $0x120] sm:$0xff] }
 0x570   :  { %3340 = vmatprep.subr.msk.mxu1 %vm163_vm3, %v633_v4 }
 0x573   :  { %3341 = vmatpush3.xpose.msk.msra.mxu1 %vm163_vm3, %v633_v4 }
 0x574   :  { %3342 = vmatprep.subr.msk.mxu1 %vm163_vm3, %v632_v6 }
 0x577   :  { %3343 = vmatpush3.xpose.msk.msra.mxu1 %vm163_vm3, %v632_v6  ;;  %v3913_v6 = vld [vmem:[#allocation2 + $0x118] sm:$0xff] }
 0x578   :  { %3344 = vmatprep.subr.msk.mxu1 %vm163_vm3, %v631_v8 }
 0x57b   :  { %3345 = vmatpush3.xpose.msk.msra.mxu1 %vm163_vm3, %v631_v8 }
 0x57c   :  { %3387 = vmatprep.subr.mxu1 %v1040_v62 }
 0x57e   :  { %3347 = vmatmul.mubr.msk.f32.vlgmr.msra.gmra.mxu1 %vm163_vm3, %v3774_v29  ;;  %v751_v29 = vmul.f32 %v3329_v28, %v3819_v55 }
 0x57f   :  { %3388 = vmatpush3.msra.mxu1 %v1040_v62  ;;  %v1263_v62 = vld [vmem:[#allocation2 + $0x260] sm:$0xff] }
 0x580   :  { %3368 = vmatprep.subr.mxu0 %v751_v29  ;;  %3389 = vmatprep.subr.mxu1 %v1039_v0 }
 0x581   :  { %3390 = vmatpush3.msra.mxu1 %v1039_v0  ;;  %v1172_v0 = vld [vmem:[#allocation2 + $0x230] sm:$0xff] }
 0x582   :  { %3391 = vmatprep.subr.mxu1 %v1038_v23 }
 0x583   :  { %3392 = vmatpush3.msra.mxu1 %v1038_v23 }
 0x584   :  { %3393 = vmatprep.subr.mxu1 %v1037_v25 }
 0x585   :  { %3394 = vmatpush3.msra.mxu1 %v1037_v25 }
 0x63e   :  { %v3348_v9 = vpop.f32.mrf.mxu1 }
 0x63f   :  { %v860_v12 = vsel %vm79_vm0, %v3348_v9, -inf }
 0x640   :  { %v848_v10 = vpop.f32.mrf.mxu1 }
 0x641   :  { %v857_v11 = vsel %vm79_vm0, %v848_v10, -inf }
 0x642   :  { %858 = vmax.xlane.f32.xlu1 %v857_v11 }
 0x646   :  { %861 = vmax.xlane.f32.xlu1 %v860_v12 }
 0x6cb   :  { %v859_v30 = vpop.xlane.xlu1 %858 }
 0x6cc   :  { %v863_v31 = vsub.f32 %v848_v10, %v859_v30 }
 0x6ce   :  { %v865_v32 = vmul.f32 1.442695, %v863_v31 }
 0x6cf   :  { %v862_v33 = vpop.xlane.xlu1 %861 }
 0x6d0   :  { %3639 = vpow2.f32 %v865_v32  ;;  %v864_v34 = vsub.f32 %v3348_v9, %v862_v33 }
 0x6d2   :  { %v867_v37 = vmul.f32 1.442695, %v864_v34 }
 0x6d4   :  { %3641 = vpow2.f32 %v867_v37 }
 0x6dd   :  { %v3640_v39 = vpop.eup %3639 }
 0x6de   :  { %v869_v41 = vmul.f32 %v3640_v39, %v3896_v38 }
 0x6e0   :  { %3365 = vmatprep.mubr.msk.f32.mxu0 %vm79_vm0, %v869_v41 }
 0x6e1   :  { %v3642_v50 = vpop.eup %3641 }
 0x6e2   :  { %v870_v51 = vmul.f32 %v3642_v50, %v3899_v47 }
 0x6e4   :  { %3366 = vmatmul.mubr.msk.f32.vlgmr.msra.gmra.mxu0 %vm79_vm0, %v870_v51 }
 0x6e5   :  { %3369 = vmatpush3.msra.mxu0 %v751_v29  ;;  %v2966_v29 = vld [vmem:[#allocation2 + $0x210] ss:$0 sm:$0xff] }
 0x6e6   :  { %3370 = vmatprep.subr.mxu0 %v750_v52 }
 0x6e7   :  { %3371 = vmatpush3.msra.mxu0 %v750_v52 }
 0x6e8   :  { %3372 = vmatprep.subr.mxu0 %v749_v53 }
 0x6e9   :  { %3373 = vmatpush3.msra.mxu0 %v749_v53 }
 0x6ea   :  { %3374 = vmatprep.subr.mxu0 %v748_v54 }
 0x6eb   :  { %3375 = vmatpush3.msra.mxu0 %v748_v54 }
 0x6ec   :  { %3376 = vmatprep.subr.mxu0 %v747_v56 }
 0x6ed   :  { %3377 = vmatpush3.msra.mxu0 %v747_v56 }
 0x6ee   :  { %3378 = vmatprep.subr.mxu0 %v746_v58 }
 0x6ef   :  { %3379 = vmatpush3.msra.mxu0 %v746_v58  ;;  %v1174_v58 = vld [vmem:[#allocation2 + $0x240] sm:$0xff] }
 0x6f0   :  { %3380 = vmatprep.subr.mxu0 %v745_v59 }
 0x6f1   :  { %3381 = vmatpush3.msra.mxu0 %v745_v59  ;;  %v1264_v59 = vld [vmem:[#allocation2 + $0x268] sm:$0xff] }
 0x6f2   :  { %3382 = vmatprep.subr.mxu0 %v744_v60  ;;  %3409 = vmatprep.subr.mxu1 %v1264_v59 }
 0x6f3   :  { %3383 = vmatpush3.msra.mxu0 %v744_v60  ;;  %v1173_v60 = vld [vmem:[#allocation2 + $0x238] sm:$0xff] }
 0x6f4   :  { %3398 = vmatprep.subr.mxu0 %v1174_v58 }
 0x7a4   :  { %v3367_v4 = vpop.f32.mrf.mxu0 }
 0x7a5   :  { %v949_v8 = vadd.f32 %v3367_v4, %v3911_v2  ;;  %v1262_v4 = vld [vmem:[#allocation2 + $0x258] sm:$0xff] }
 0x7a6   :  { %v943_v9 = vpop.f32.mrf.mxu0 }
 0x7a7   :  { %v944_v10 = vadd.f32 %v943_v9, %v3913_v6  ;;  %3643 = vrcp.f32 %v949_v8  ;;  %v1171_v8 = vld [vmem:[#allocation2 + $0x228] sm:$0xff]  ;;  %v1261_v9 = vld [vmem:[#allocation2 + $0x250] sm:$0xff] }
 0x7a9   :  { %3645 = vrcp.f32 %v944_v10 }
 0x7b4   :  { %v3644_v11 = vpop.eup %3643 }
 0x7b5   :  { %v3919_v22 = vmul.f32 %v3644_v11, %v870_v51 }
 0x7b6   :  { %v3646_v12 = vpop.eup %3645 }
 0x7b7   :  { %v3917_v21 = vmul.f32 %v3646_v12, %v869_v41 }
 0x7b9   :  { %3384 = vmatprep.mubr.msk.f32.mxu0 %vm79_vm0, %v3917_v21 }
 0x7ba   :  { %3385 = vmatmul.mubr.msk.f32.vlgmr.msra.gmra.mxu0 %vm79_vm0, %v3919_v22 }
 0x7bb   :  { %3399 = vmatpush3.msra.mxu0 %v1174_v58  ;;  %v2969_v58 = vld [vmem:[#allocation2 + $0x248] ss:$0 sm:$0xff] }
 0x7bc   :  { %3400 = vmatprep.subr.mxu0 %v1173_v60 }
 0x7bd   :  { %3401 = vmatpush3.msra.mxu0 %v1173_v60 }
 0x7be   :  { %3402 = vmatprep.subr.mxu0 %v1172_v0 }
 0x7bf   :  { %3403 = vmatpush3.msra.mxu0 %v1172_v0 }
 0x7c0   :  { %3404 = vmatprep.subr.mxu0 %v1171_v8 }
 0x7c1   :  { %3405 = vmatpush3.msra.mxu0 %v1171_v8 }
 0x87a   :  { %v3386_v26 = vpop.f32.mrf.mxu0 }
 0x87c   :  { %v1028_v27 = vpop.f32.mrf.mxu0 }
 0x87d   :  { %3395 = vmatprep.mubr.msk.f32.mxu1 %vm163_vm3, %v1028_v27 }
 0x87e   :  { %3396 = vmatmul.mubr.msk.f32.vlgmr.msra.gmra.mxu1 %vm163_vm3, %v3386_v26 }
 0x87f   :  { %3410 = vmatpush3.msra.mxu1 %v1264_v59 }
 0x880   :  { %3411 = vmatprep.subr.mxu1 %v1263_v62 }
 0x881   :  { %3412 = vmatpush3.msra.mxu1 %v1263_v62 }
 0x882   :  { %3413 = vmatprep.subr.mxu1 %v1262_v4 }
 0x883   :  { %3414 = vmatpush3.msra.mxu1 %v1262_v4 }
 0x884   :  { %3415 = vmatprep.subr.mxu1 %v1261_v9 }
 0x885   :  { %3416 = vmatpush3.msra.mxu1 %v1261_v9 }
 0x93e   :  { %v3397_v28 = vpop.f32.mrf.mxu1 }
 0x93f   :  { %v1123_v30 = vadd.f32 %v3397_v28, %v3754_v48  ;;  %v2967_v28 = vld [vmem:[#allocation2 + $0x218] ss:$0 sm:$0xff] }
 0x940   :  { %v1113_v31 = vpop.f32.mrf.mxu1 }
 0x941   :  { %v3928_v32 = vadd.f32 %v2966_v29, %v1123_v30  ;;  %v1122_v33 = vadd.f32 %v1113_v31, %v3750_v44 }
 0x943   :  { %v3931_v34 = vadd.f32 %v2966_v29, %v1122_v33  ;;  %v1136_v37 = vsel %vm163_vm3, %v3928_v32, 0.0 }
 0x944   :  { %1137 = vadd.xlane.f32.xlu0 %v1136_v37  ;;  %v2968_v37 = vld [vmem:[#allocation2 + $0x220] ss:$0 sm:$0xff] }
 0x945   :  { %v1133_v39 = vsel %vm163_vm3, %v3931_v34, 0.0 }
 0x946   :  { %1134 = vadd.xlane.f32.xlu1 %v1133_v39 }
 0x9cd   :  { %v1138_v41 = vpop.xlane.xlu0 %1137 }
 0x9ce   :  { %v1140_v49 = vmul.f32 0.03125, %v1138_v41 }
 0x9cf   :  { %v1135_v50 = vpop.xlane.xlu1 %1134 }
 0x9d0   :  { %v1142_v48 = vsub.f32 %v3928_v32, %v1140_v49  ;;  %v1139_v51 = vmul.f32 0.03125, %v1135_v50  ;;  %v1406_v50 = vld [vmem:[#allocation2 + $0x2b0] sm:$0xff] }
 0x9d1   :  { %3420 = vmatprep.subr.mxu0 %v1406_v50 }
 0x9d2   :  { %v1141_v52 = vsub.f32 %v3931_v34, %v1139_v51  ;;  %v1144_v53 = vmul.f32 %v1142_v48, %v1142_v48  ;;  %v1405_v51 = vld [vmem:[#allocation2 + $0x2a8] sm:$0xff] }
 0x9d4   :  { %v1148_v44 = vsel %vm163_vm3, %v1144_v53, 0.0  ;;  %v1143_v54 = vmul.f32 %v1141_v52, %v1141_v52  ;;  %v1402_v53 = vld [vmem:[#allocation2 + $0x290] sm:$0xff] }
 0x9d5   :  { %1149 = vadd.xlane.f32.xlu0 %v1148_v44  ;;  %v1401_v44 = vld [vmem:[#allocation2 + $0x288] sm:$0xff] }
 0x9d6   :  { %v1145_v56 = vsel %vm163_vm3, %v1143_v54, 0.0  ;;  %v1400_v54 = vld [vmem:[#allocation2 + $0x280] sm:$0xff] }
 0x9d7   :  { %1146 = vadd.xlane.f32.xlu1 %v1145_v56  ;;  %v1399_v56 = vld [vmem:[#allocation2 + $0x278] sm:$0xff] }
 0xa5e   :  { %v1150_v10 = vpop.xlane.xlu0 %1149 }
 0xa5f   :  { %v1152_v11 = vmul.f32 0.03125, %v1150_v10 }
 0xa60   :  { %v1147_v12 = vpop.xlane.xlu1 %1146 }
 0xa61   :  { %v1154_v23 = vadd.f32 1e-05, %v1152_v11  ;;  %v1151_v25 = vmul.f32 0.03125, %v1147_v12 }
 0xa63   :  { %3647 = vrsqrt.f32 %v1154_v23  ;;  %v1153_v26 = vadd.f32 1e-05, %v1151_v25 }
 0xa65   :  { %3649 = vrsqrt.f32 %v1153_v26 }
 0xa70   :  { %v3648_v27 = vpop.eup %3647 }
 0xa71   :  { %v1158_v29 = vmul.f32 %v3648_v27, %v1142_v48  ;;  %v1404_v48 = vld [vmem:[#allocation2 + $0x2a0] sm:$0xff] }
 0xa72   :  { %v3650_v30 = vpop.eup %3649 }
 0xa73   :  { %v1157_v31 = vmul.f32 %v3650_v30, %v1141_v52  ;;  %v1164_v33 = vmul.f32 %v2967_v28, %v1158_v29  ;;  %v1403_v52 = vld [vmem:[#allocation2 + $0x298] sm:$0xff] }
 0xa75   :  { %v1163_v39 = vmul.f32 %v2967_v28, %v1157_v31  ;;  %v1170_v49 = vadd.f32 %v2968_v37, %v1164_v33 }
 0xa77   :  { %v1169_v41 = vadd.f32 %v2968_v37, %v1163_v39 }
 0xa79   :  { %3406 = vmatprep.mubr.msk.f32.mxu0 %vm163_vm3, %v1169_v41  ;;  %3417 = vmatprep.mubr.msk.f32.mxu1 %vm163_vm3, %v1169_v41 }
 0xa7a   :  { %3407 = vmatmul.mubr.msk.f32.vlgmr.msra.gmra.mxu0 %vm163_vm3, %v1170_v49  ;;  %3418 = vmatmul.mubr.msk.f32.vlgmr.msra.gmra.mxu1 %vm163_vm3, %v1170_v49 }
 0xa7b   :  { %3421 = vmatpush3.msra.mxu0 %v1406_v50 }
 0xa7c   :  { %3422 = vmatprep.subr.mxu0 %v1405_v51 }
 0xa7d   :  { %3423 = vmatpush3.msra.mxu0 %v1405_v51 }
 0xa7e   :  { %3424 = vmatprep.subr.mxu0 %v1404_v48 }
 0xa7f   :  { %3425 = vmatpush3.msra.mxu0 %v1404_v48 }
 0xa80   :  { %3426 = vmatprep.subr.mxu0 %v1403_v52 }
 0xa81   :  { %3427 = vmatpush3.msra.mxu0 %v1403_v52 }
 0xa82   :  { %3428 = vmatprep.subr.mxu0 %v1402_v53 }
 0xa83   :  { %3429 = vmatpush3.msra.mxu0 %v1402_v53 }
 0xa84   :  { %3430 = vmatprep.subr.mxu0 %v1401_v44 }
 0xa85   :  { %3431 = vmatpush3.msra.mxu0 %v1401_v44 }
 0xa86   :  { %3432 = vmatprep.subr.mxu0 %v1400_v54 }
 0xa87   :  { %3433 = vmatpush3.msra.mxu0 %v1400_v54 }
 0xa88   :  { %3434 = vmatprep.subr.mxu0 %v1399_v56 }
 0xa89   :  { %3435 = vmatpush3.msra.mxu0 %v1399_v56 }
 0xb3a   :  { %v3408_v59 = vpop.f32.mrf.mxu0 }
 0xb3b   :  { %v1258_v60 = vadd.f32 %v3408_v59, %v2969_v58 }
 0xb3c   :  { %v1252_v62 = vpop.f32.mrf.mxu0 }
 0xb3d   :  { %v1348_v0 = vmul.f32 0.70710677, %v1258_v60  ;;  %v1253_v4 = vadd.f32 %v2969_v58, %v1252_v62 }
 0xb3f   :  { %v1350_v8 = vand.u32 2147483647, %v1348_v0  ;;  %v1347_v9 = vmul.f32 0.70710677, %v1253_v4  ;;  %vm1388_vm5 = vcmp.ge.f32.partialorder %v1348_v0, 0.0 }
 0xb41   :  { %v1352_v10 = vmul.f32 0.3275911, %v1350_v8  ;;  %v1349_v11 = vand.u32 2147483647, %v1347_v9  ;;  %v1376_v26 = vsub.f32 0.0, %v1350_v8  ;;  %vm1387_vm6 = vcmp.ge.f32.partialorder %v1347_v9, 0.0 }
 0xb43   :  { %v1354_v12 = vadd.f32 1.0, %v1352_v10  ;;  %v1351_v23 = vmul.f32 0.3275911, %v1349_v11  ;;  %v1375_v27 = vsub.f32 0.0, %v1349_v11  ;;  %v1378_v28 = vmul.f32 %v1376_v26, %v1350_v8 }
 0xb45   :  { %3651 = vrcp.f32 %v1354_v12  ;;  %v1353_v25 = vadd.f32 1.0, %v1351_v23  ;;  %v1377_v30 = vmul.f32 %v1375_v27, %v1349_v11  ;;  %v1381_v31 = vmul.f32 1.442695, %v1378_v28 }
 0xb47   :  { %3653 = vrcp.f32 %v1353_v25  ;;  %v1379_v41 = vmul.f32 1.442695, %v1377_v30 }
 0xb48   :  { %3655 = vpow2.f32 %v1381_v31  ;;  %v3419_v31 = vpop.f32.mrf.mxu1 }
 0xb49   :  { %3657 = vpow2.f32 %v1379_v41 }
 0xb52   :  { %v3652_v29 = vpop.eup %3651 }
 0xb53   :  { %v1358_v33 = vmul.f32 1.0614054, %v3652_v29 }
 0xb54   :  { %v3654_v37 = vpop.eup %3653 }
 0xb55   :  { %v1360_v39 = vadd.f32 -1.4531521, %v1358_v33  ;;  %v1357_v49 = vmul.f32 1.0614054, %v3654_v37  ;;  %v3656_v11 = vpop.eup %3655 }
 0xb56   :  { %v3658_v26 = vpop.eup %3657 }
 0xb57   :  { %v1362_v50 = vmul.f32 %v3652_v29, %v1360_v39  ;;  %v1359_v51 = vadd.f32 -1.4531521, %v1357_v49 }
 0xb59   :  { %v1364_v48 = vadd.f32 1.4214138, %v1362_v50  ;;  %v1361_v52 = vmul.f32 %v3654_v37, %v1359_v51  ;;  %v1346_v50 = vmul.f32 0.5, %v1258_v60  ;;  %v1336_v51 = vpop.f32.mrf.mxu1 }
 0xb5b   :  { %v1366_v53 = vmul.f32 %v3652_v29, %v1364_v48  ;;  %v1363_v44 = vadd.f32 1.4214138, %v1361_v52  ;;  %v2972_v52 = vld [vmem:[#allocation2 + $0x270] ss:$0 sm:$0xff] }
 0xb5d   :  { %v1368_v54 = vadd.f32 -0.28449672, %v1366_v53  ;;  %v1365_v56 = vmul.f32 %v3654_v37, %v1363_v44 }
 0xb5f   :  { %v1370_v58 = vmul.f32 %v3652_v29, %v1368_v54  ;;  %v1367_v59 = vadd.f32 -0.28449672, %v1365_v56  ;;  %v1337_v54 = vadd.f32 %v2972_v52, %v1336_v51  ;;  %v1342_v56 = vadd.f32 %v3419_v31, %v2972_v52  ;;  %v1538_v51 = vld [vmem:[#allocation2 + $0x2d8] sm:$0xff]  ;;  %v1537_v52 = vld [vmem:[#allocation2 + $0x2d0] sm:$0xff] }
 0xb61   :  { %v1372_v62 = vadd.f32 0.2548296, %v1370_v58  ;;  %v1369_v8 = vmul.f32 %v3654_v37, %v1367_v59 }
 0xb63   :  { %v1374_v10 = vmul.f32 %v3652_v29, %v1372_v62  ;;  %v1371_v12 = vadd.f32 0.2548296, %v1369_v8  ;;  %v1345_v29 = vmul.f32 0.5, %v1253_v4  ;;  %v2977_v62 = vld [vmem:[#allocation2 + $0x2b8] ss:$0 sm:$0xff] }
 0xb65   :  { %v1384_v23 = vmul.f32 %v3656_v11, %v1374_v10  ;;  %v1373_v25 = vmul.f32 %v3654_v37, %v1371_v12 }
 0xb67   :  { %v1386_v27 = vsub.f32 1.0, %v1384_v23  ;;  %v1383_v28 = vmul.f32 %v3658_v26, %v1373_v25 }
 0xb69   :  { %v1390_v30 = vsub.f32 0.0, %v1386_v27  ;;  %v1385_v33 = vsub.f32 1.0, %v1383_v28 }
 0xb6b   :  { %v1392_v39 = vsel %vm1388_vm5, %v1386_v27, %v1390_v30  ;;  %v1389_v49 = vsub.f32 0.0, %v1385_v33 }
 0xb6c   :  { %v1394_v41 = vadd.f32 1.0, %v1392_v39  ;;  %v1540_v39 = vld [vmem:[#allocation2 + $0x2e8] sm:$0xff] }
 0xb6d   :  { %v1391_v48 = vsel %vm1387_vm6, %v1385_v33, %v1389_v49  ;;  %v1539_v49 = vld [vmem:[#allocation2 + $0x2e0] sm:$0xff]  ;;  %3439 = vmatprep.subr.mxu1 %v1540_v39 }
 0xb6e   :  { %v1393_v53 = vadd.f32 1.0, %v1391_v48  ;;  %v1396_v44 = vmul.f32 %v1394_v41, %v1346_v50  ;;  %v1714_v41 = vld [vmem:[#allocation2 + $0x338] sm:$0xff]  ;;  %v1713_v50 = vld [vmem:[#allocation2 + $0x330] sm:$0xff]  ;;  %3440 = vmatpush3.msra.mxu1 %v1540_v39  ;;  %v1712_v48 = vld [vmem:[#allocation2 + $0x328] sm:$0xff] }
 0xb6f   :  { %3461 = vmatprep.subr.mxu0 %v1714_v41  ;;  %3441 = vmatprep.subr.mxu1 %v1539_v49 }
 0xb70   :  { %v1395_v37 = vmul.f32 %v1393_v53, %v1345_v29  ;;  %v1398_v59 = vmul.f32 %v1396_v44, %v1342_v56  ;;  %3442 = vmatpush3.msra.mxu1 %v1539_v49  ;;  %v1711_v29 = vld [vmem:[#allocation2 + $0x320] sm:$0xff]  ;;  %v1630_v53 = vld [vmem:[#allocation2 + $0x310] sm:$0xff] }
 0xb71   :  { %3443 = vmatprep.subr.mxu1 %v1538_v51 }
 0xb72   :  { %v1397_v58 = vmul.f32 %v1395_v37, %v1337_v54  ;;  %3444 = vmatpush3.msra.mxu1 %v1538_v51 }
 0xb73   :  { %3445 = vmatprep.subr.mxu1 %v1537_v52 }
 0xb74   :  { %3436 = vmatprep.mubr.msk.f32.mxu0 %vm79_vm0, %v1397_v58  ;;  %3446 = vmatpush3.msra.mxu1 %v1537_v52 }
 0xb75   :  { %3437 = vmatmul.mubr.msk.f32.vlgmr.msra.gmra.mxu0 %vm79_vm0, %v1398_v59  ;;  %3450 = vmatprep.subr.mxu1 %v1630_v53 }
 0xb76   :  { %3462 = vmatpush3.msra.mxu0 %v1714_v41 }
 0xb77   :  { %3463 = vmatprep.subr.mxu0 %v1713_v50 }
 0xb78   :  { %3464 = vmatpush3.msra.mxu0 %v1713_v50 }
 0xb79   :  { %3465 = vmatprep.subr.mxu0 %v1712_v48 }
 0xb7a   :  { %3466 = vmatpush3.msra.mxu0 %v1712_v48  ;;  %v2983_v48 = vld [vmem:[#allocation2 + $0x318] ss:$0 sm:$0xff] }
 0xb7b   :  { %3467 = vmatprep.subr.mxu0 %v1711_v29 }
 0xb7c   :  { %3468 = vmatpush3.msra.mxu0 %v1711_v29 }
 0xc35   :  { %v3438_v0 = vpop.f32.mrf.mxu0 }
 0xc36   :  { %v1489_v9 = vadd.f32 %v3438_v0, %v3928_v32 }
 0xc37   :  { %v1479_v60 = vpop.f32.mrf.mxu0 }
 0xc38   :  { %v3948_v8 = vadd.f32 %v2977_v62, %v1489_v9  ;;  %v1488_v4 = vadd.f32 %v1479_v60, %v3931_v34 }
 0xc3a   :  { %v3951_v10 = vadd.f32 %v2977_v62, %v1488_v4  ;;  %v1502_v11 = vsel %vm163_vm3, %v3948_v8, 0.0  ;;  %v2978_v62 = vld [vmem:[#allocation2 + $0x2c0] ss:$0 sm:$0xff] }
 0xc3b   :  { %1503 = vadd.xlane.f32.xlu0 %v1502_v11 }
 0xc3c   :  { %v1499_v12 = vsel %vm163_vm3, %v3951_v10, 0.0 }
 0xc3d   :  { %1500 = vadd.xlane.f32.xlu1 %v1499_v12  ;;  %v2979_v12 = vld [vmem:[#allocation2 + $0x2c8] ss:$0 sm:$0xff] }
 0xcc4   :  { %v1504_v23 = vpop.xlane.xlu0 %1503 }
 0xcc5   :  { %v1506_v25 = vmul.f32 0.03125, %v1504_v23 }
 0xcc6   :  { %v1501_v26 = vpop.xlane.xlu1 %1500 }
 0xcc7   :  { %v1508_v32 = vsub.f32 %v3948_v8, %v1506_v25  ;;  %v1505_v27 = vmul.f32 0.03125, %v1501_v26 }
 0xcc9   :  { %v1507_v28 = vsub.f32 %v3951_v10, %v1505_v27  ;;  %v1510_v30 = vmul.f32 %v1508_v32, %v1508_v32  ;;  %v1629_v27 = vld [vmem:[#allocation2 + $0x308] sm:$0xff] }
 0xccb   :  { %v1514_v34 = vsel %vm163_vm3, %v1510_v30, 0.0  ;;  %v1509_v31 = vmul.f32 %v1507_v28, %v1507_v28  ;;  %v2980_v30 = vld [vmem:[#allocation2 + $0x2f0] ss:$0 sm:$0xff] }
 0xccc   :  { %1515 = vadd.xlane.f32.xlu0 %v1514_v34  ;;  %v2986_v34 = vld [vmem:[#allocation2 + $0x340] ss:$0 sm:$0xff] }
 0xccd   :  { %v1511_v33 = vsel %vm163_vm3, %v1509_v31, 0.0 }
 0xcce   :  { %1512 = vadd.xlane.f32.xlu1 %v1511_v33 }
 0xd55   :  { %v1516_v44 = vpop.xlane.xlu0 %1515 }
 0xd56   :  { %v1518_v54 = vmul.f32 0.03125, %v1516_v44 }
 0xd57   :  { %v1513_v37 = vpop.xlane.xlu1 %1512 }
 0xd58   :  { %v1520_v56 = vadd.f32 1e-05, %v1518_v54  ;;  %v1517_v58 = vmul.f32 0.03125, %v1513_v37 }
 0xd5a   :  { %3659 = vrsqrt.f32 %v1520_v56  ;;  %v1519_v59 = vadd.f32 1e-05, %v1517_v58 }
 0xd5c   :  { %3661 = vrsqrt.f32 %v1519_v59 }
 0xd67   :  { %v3660_v0 = vpop.eup %3659 }
 0xd68   :  { %v1524_v9 = vmul.f32 %v3660_v0, %v1508_v32  ;;  %v1628_v32 = vld [vmem:[#allocation2 + $0x300] sm:$0xff] }
 0xd69   :  { %v3662_v60 = vpop.eup %3661 }
 0xd6a   :  { %v1523_v4 = vmul.f32 %v3662_v60, %v1507_v28  ;;  %v1530_v11 = vmul.f32 %v2978_v62, %v1524_v9  ;;  %v1627_v28 = vld [vmem:[#allocation2 + $0x2f8] sm:$0xff] }
 0xd6c   :  { %v1529_v23 = vmul.f32 %v2978_v62, %v1523_v4  ;;  %v1536_v26 = vadd.f32 %v2979_v12, %v1530_v11 }
 0xd6e   :  { %v1535_v25 = vadd.f32 %v2979_v12, %v1529_v23 }
 0xd70   :  { %3447 = vmatprep.mubr.msk.f32.mxu1 %vm163_vm3, %v1535_v25  ;;  %3469 = vmatprep.mubr.msk.f32.mxu0 %vm163_vm3, %v1535_v25 }
 0xd71   :  { %3448 = vmatmul.mubr.msk.f32.vlgmr.msra.gmra.mxu1 %vm163_vm3, %v1536_v26  ;;  %3470 = vmatmul.mubr.msk.f32.vlgmr.msra.gmra.mxu0 %vm163_vm3, %v1536_v26 }
 0xd72   :  { %3451 = vmatpush3.msra.mxu1 %v1630_v53  ;;  %3458 = vmatprep.mubr.msk.f32.mxu1 %vm163_vm3, %v1535_v25 }
 0xd73   :  { %3452 = vmatprep.subr.mxu1 %v1629_v27  ;;  %3492 = vmatprep.mubr.msk.f32.mxu0 %vm501_vm4, %v3768_v24 }
 0xd74   :  { %3453 = vmatpush3.msra.mxu1 %v1629_v27 }
 0xd75   :  { %3454 = vmatprep.subr.mxu1 %v1628_v32 }
 0xd76   :  { %3455 = vmatpush3.msra.mxu1 %v1628_v32 }
 0xd77   :  { %3456 = vmatprep.subr.mxu1 %v1627_v28 }
 0xd78   :  { %3457 = vmatpush3.msra.mxu1 %v1627_v28 }
 0xd79   :  { %3459 = vmatmul.mubr.msk.f32.vlgmr.msra.gmra.mxu1 %vm163_vm3, %v1536_v26 }
 0xd7a   :  { %3476 = vmatprep.mubr.msk.f32.mxu1 %vm501_vm4, %v3768_v24 }
 0xe31   :  { %v3449_v31 = vpop.f32.mrf.mxu1  ;;  %v3471_v33 = vpop.f32.mrf.mxu0 }
 0xe32   :  { %v3971_v39 = vadd.f32 %v3449_v31, %v2980_v30  ;;  %v1792_v41 = vadd.f32 %v3471_v33, %v2986_v34 }
 0xe33   :  { %v1786_v49 = vpop.f32.mrf.mxu0  ;;  %v1618_v51 = vpop.f32.mrf.mxu1 }
 0xe34   :  { %v1787_v50 = vadd.f32 %v2986_v34, %v1786_v49  ;;  %3488 = vmatprep.subr.mxu0 %v1792_v41 }
 0xe35   :  { %3489 = vmatpush3.msra.mxu0 %v1792_v41 }
 0xe36   :  { %3490 = vmatprep.subr.mxu0 %v1787_v50 }
 0xe37   :  { %3491 = vmatpush3.msra.mxu0 %v1787_v50 }
 0xe38   :  { %3493 = vmatmul.mubr.msk.f32.vlgmr.msra.gmra.mxu0 %vm501_vm4, %v3776_v35  ;;  %3523 = vmatprep.subr.mxu0 %v3863_v13 }
 0xe39   :  { %v3460_v24 = vpop.f32.mrf.mxu1  ;;  %3495 = vmatprep.mubr.msk.f32.mxu0 %vm501_vm4, %v3778_v36  ;;  %3524 = vmatpush3.msra.mxu0 %v3863_v13 }
 0xe3a   :  { %v1708_v52 = vadd.f32 %v3460_v24, %v2983_v48  ;;  %3525 = vmatprep.subr.mxu0 %v3867_v14 }
 0xe3b   :  { %v1702_v29 = vpop.f32.mrf.mxu1  ;;  %3526 = vmatpush3.msra.mxu0 %v3867_v14 }
 0xe3c   :  { %v1703_v53 = vadd.f32 %v2983_v48, %v1702_v29  ;;  %3472 = vmatprep.subr.mxu1 %v1708_v52  ;;  %3496 = vmatmul.mubr.msk.f32.gmra.mxu0 %vm501_vm4, %v3784_v40 }
 0xe3d   :  { %3473 = vmatpush3.msra.mxu1 %v1708_v52  ;;  %3498 = vmatprep.mubr.msk.f32.mxu0 %vm501_vm4, %v3786_v42 }
 0xe3e   :  { %3474 = vmatprep.subr.mxu1 %v1703_v53  ;;  %3527 = vmatprep.subr.mxu0 %v3871_v15 }
 0xe3f   :  { %3475 = vmatpush3.msra.mxu1 %v1703_v53  ;;  %3528 = vmatpush3.msra.mxu0 %v3871_v15  ;;  %v2307_v53 = vld [vmem:[#allocation2 + $0x350] sm:$0xff] }
 0xe40   :  { %3477 = vmatmul.mubr.msk.f32.vlgmr.msra.gmra.mxu1 %vm501_vm4, %v3776_v35  ;;  %3499 = vmatmul.mubr.msk.f32.gmra.mxu0 %vm501_vm4, %v3792_v43  ;;  %v1619_v35 = vadd.f32 %v2980_v30, %v1618_v51 }
 0xe41   :  { %3479 = vmatprep.mubr.msk.f32.mxu1 %vm501_vm4, %v3778_v36  ;;  %3501 = vmatprep.mubr.msk.f32.mxu0 %vm501_vm4, %v3796_v45 }
 0xe42   :  { %3529 = vmatprep.subr.mxu0 %v3875_v16 }
 0xe43   :  { %3530 = vmatpush3.msra.mxu0 %v3875_v16 }
 0xe44   :  { %3480 = vmatmul.mubr.msk.f32.gmra.mxu1 %vm501_vm4, %v3784_v40  ;;  %3502 = vmatmul.mubr.msk.f32.gmra.mxu0 %vm501_vm4, %v3804_v46 }
 0xe45   :  { %3482 = vmatprep.mubr.msk.f32.mxu1 %vm501_vm4, %v3786_v42  ;;  %3531 = vmatprep.subr.mxu0 %v3879_v17 }
 0xe46   :  { %3532 = vmatpush3.msra.mxu0 %v3879_v17 }
 0xe47   :  { %3533 = vmatprep.subr.mxu0 %v3883_v18 }
 0xe48   :  { %3483 = vmatmul.mubr.msk.f32.gmra.mxu1 %vm501_vm4, %v3792_v43  ;;  %3534 = vmatpush3.msra.mxu0 %v3883_v18 }
 0xe49   :  { %3485 = vmatprep.mubr.msk.f32.mxu1 %vm501_vm4, %v3796_v45  ;;  %3535 = vmatprep.subr.mxu0 %v3887_v19 }
 0xe4a   :  { %3536 = vmatpush3.msra.mxu0 %v3887_v19 }
 0xe4b   :  { %3537 = vmatprep.subr.mxu0 %v3891_v20 }
 0xe4c   :  { %3486 = vmatmul.mubr.msk.f32.gmra.mxu1 %vm501_vm4, %v3804_v46  ;;  %3538 = vmatpush3.msra.mxu0 %v3891_v20 }
 0xe4d   :  { %3520 = vmatprep.mubr.msk.f32.mxu1 %vm163_vm3, %v1619_v35 }
 0xef8   :  { %v3494_v0 = vpop.f32.mrf.mxu0 }
 0xefa   :  { %v1974_v62 = vpop.f32.mrf.mxu0 }
 0xefc   :  { %v3497_v9 = vpop.f32.mrf.mxu0 }
 0xefd   :  { %v2016_v51 = vmul.f32 %v3497_v9, %v3836_v1  ;;  %v2531_v9 = vld [vmem:[#allocation2 + $0x3b0] sm:$0xff] }
 0xefe   :  { %v1984_v60 = vpop.f32.mrf.mxu0 }
 0xf00   :  { %v3478_v36 = vpop.f32.mrf.mxu1  ;;  %v3500_v4 = vpop.f32.mrf.mxu0 }
 0xf01   :  { %v1901_v44 = vmul.f32 %v3478_v36, %v3846_v5 }
 0xf02   :  { %v1861_v40 = vpop.f32.mrf.mxu1  ;;  %v1994_v11 = vpop.f32.mrf.mxu0 }
 0xf03   :  { %v1900_v54 = vmul.f32 %v1861_v40, %v3851_v7  ;;  %v2017_v50 = vmul.f32 %v1994_v11, %v3831_v63  ;;  %v3021_v40 = vld [vmem:[#allocation2 + $0x368] ss:$0 sm:$0xff] }
 0xf04   :  { %v3481_v42 = vpop.f32.mrf.mxu1  ;;  %v3503_v12 = vpop.f32.mrf.mxu0 }
 0xf05   :  { %v1903_v19 = vmul.f32 %v3481_v42, %v3836_v1  ;;  %v2020_v23 = vmul.f32 %v3503_v12, %v3819_v55 }
 0xf06   :  { %v1871_v43 = vpop.f32.mrf.mxu1  ;;  %v2004_v31 = vpop.f32.mrf.mxu0 }
 0xf07   :  { %v1902_v20 = vmul.f32 %v1871_v43, %v3841_v3  ;;  %3542 = vmatprep.subr.mxu0 %v2020_v23  ;;  %v2019_v49 = vmul.f32 %v2004_v31, %v3821_v57 }
 0xf08   :  { %v3484_v13 = vpop.f32.mrf.mxu1 }
 0xf09   :  { %v1905_v46 = vmul.f32 %v3484_v13, %v3826_v61 }
 0xf0a   :  { %v1881_v45 = vpop.f32.mrf.mxu1 }
 0xf0b   :  { %v1904_v18 = vmul.f32 %v1881_v45, %v3831_v63  ;;  %v2308_v63 = vld [vmem:[#allocation2 + $0x358] sm:$0xff] }
 0xf0c   :  { %v3487_v14 = vpop.f32.mrf.mxu1 }
 0xf0d   :  { %v1907_v15 = vmul.f32 %v3487_v14, %v3819_v55  ;;  %v2018_v55 = vmul.f32 %v3500_v4, %v3826_v61  ;;  %v2309_v61 = vld [vmem:[#allocation2 + $0x360] sm:$0xff]  ;;  %v2530_v4 = vld [vmem:[#allocation2 + $0x3a8] sm:$0xff] }
 0xf0e   :  { %v1891_v16 = vpop.f32.mrf.mxu1 }
 0xf0f   :  { %v1906_v17 = vmul.f32 %v1891_v16, %v3821_v57  ;;  %3504 = vmatprep.subr.msk.mxu1 %vm163_vm3, %v1907_v15  ;;  %v2014_v57 = vmul.f32 %v3494_v0, %v3846_v5  ;;  %v2532_v0 = vld [vmem:[#allocation2 + $0x3b8] sm:$0xff] }
 0xf10   :  { %3505 = vmatpush3.xpose.msk.msra.mxu1 %vm163_vm3, %v1907_v15 }
 0xf11   :  { %3506 = vmatprep.subr.msk.mxu1 %vm163_vm3, %v1906_v17 }
 0xf14   :  { %3507 = vmatpush3.xpose.msk.msra.mxu1 %vm163_vm3, %v1906_v17 }
 0xf15   :  { %3508 = vmatprep.subr.msk.mxu1 %vm163_vm3, %v1905_v46 }
 0xf18   :  { %3509 = vmatpush3.xpose.msk.msra.mxu1 %vm163_vm3, %v1905_v46 }
 0xf19   :  { %3510 = vmatprep.subr.msk.mxu1 %vm163_vm3, %v1904_v18 }
 0xf1c   :  { %3511 = vmatpush3.xpose.msk.msra.mxu1 %vm163_vm3, %v1904_v18 }
 0xf1d   :  { %3512 = vmatprep.subr.msk.mxu1 %vm163_vm3, %v1903_v19 }
 0xf20   :  { %3513 = vmatpush3.xpose.msk.msra.mxu1 %vm163_vm3, %v1903_v19 }
 0xf21   :  { %3514 = vmatprep.subr.msk.mxu1 %vm163_vm3, %v1902_v20 }
 0xf24   :  { %3515 = vmatpush3.xpose.msk.msra.mxu1 %vm163_vm3, %v1902_v20 }
 0xf25   :  { %3516 = vmatprep.subr.msk.mxu1 %vm163_vm3, %v1901_v44 }
 0xf28   :  { %3517 = vmatpush3.xpose.msk.msra.mxu1 %vm163_vm3, %v1901_v44 }
 0xf29   :  { %3518 = vmatprep.subr.msk.mxu1 %vm163_vm3, %v1900_v54 }
 0xf2c   :  { %3519 = vmatpush3.xpose.msk.msra.mxu1 %vm163_vm3, %v1900_v54 }
 0xf2d   :  { %3561 = vmatprep.subr.mxu1 %v2309_v61 }
 0xf2f   :  { %3521 = vmatmul.mubr.msk.f32.vlgmr.msra.gmra.mxu1 %vm163_vm3, %v3971_v39 }
 0xf30   :  { %3562 = vmatpush3.msra.mxu1 %v2309_v61  ;;  %v2670_v61 = vld [vmem:[#allocation2 + $0x3e0] sm:$0xff] }
 0xf31   :  { %3563 = vmatprep.subr.mxu1 %v2308_v63 }
 0xf32   :  { %3564 = vmatpush3.msra.mxu1 %v2308_v63  ;;  %v2669_v63 = vld [vmem:[#allocation2 + $0x3d8] sm:$0xff] }
 0xf33   :  { %3565 = vmatprep.subr.mxu1 %v2307_v53 }
 0xf34   :  { %3566 = vmatpush3.msra.mxu1 %v2307_v53 }
 0xfef   :  { %v3522_v37 = vpop.f32.mrf.mxu1 }
 0xff0   :  { %v2129_v56 = vsel %vm79_vm0, %v3522_v37, -inf }
 0xff1   :  { %2130 = vmax.xlane.f32.xlu0 %v2129_v56  ;;  %v2117_v58 = vpop.f32.mrf.mxu1  ;;  %v2443_v56 = vld [vmem:[#allocation2 + $0x398] sm:$0xff] }
 0xff2   :  { %v2126_v59 = vsel %vm79_vm0, %v2117_v58, -inf }
 0xff3   :  { %2127 = vmax.xlane.f32.xlu1 %v2126_v59  ;;  %v2442_v59 = vld [vmem:[#allocation2 + $0x390] sm:$0xff] }
0x107a   :  { %v2131_v25 = vpop.xlane.xlu0 %2130 }
0x107b   :  { %v2133_v26 = vsub.f32 %v3522_v37, %v2131_v25 }
0x107c   :  { %v2128_v27 = vpop.xlane.xlu1 %2127 }
0x107d   :  { %v2136_v32 = vmul.f32 1.442695, %v2133_v26  ;;  %v2132_v28 = vsub.f32 %v2117_v58, %v2128_v27  ;;  %v2533_v58 = vld [vmem:[#allocation2 + $0x3c0] sm:$0xff] }
0x107f   :  { %v2134_v30 = vmul.f32 1.442695, %v2132_v28  ;;  %3663 = vpow2.f32 %v2136_v32  ;;  %v3022_v28 = vld [vmem:[#allocation2 + $0x370] ss:$0 sm:$0xff] }
0x1081   :  { %3665 = vpow2.f32 %v2134_v30 }
0x108c   :  { %v3664_v34 = vpop.eup %3663 }
0x108d   :  { %v2139_v41 = vmul.f32 %v3664_v34, %v3899_v47  ;;  %v2013_v47 = vmul.f32 %v1974_v62, %v3851_v7  ;;  %v2441_v62 = vld [vmem:[#allocation2 + $0x388] sm:$0xff] }
0x108e   :  { %v3666_v33 = vpop.eup %3665 }
0x108f   :  { %v2138_v39 = vmul.f32 %v3666_v33, %v3896_v38  ;;  %v2015_v38 = vmul.f32 %v1984_v60, %v3841_v3  ;;  %v2440_v60 = vld [vmem:[#allocation2 + $0x380] sm:$0xff] }
0x1091   :  { %3539 = vmatprep.mubr.msk.f32.mxu0 %vm79_vm0, %v2138_v39 }
0x1092   :  { %3540 = vmatmul.mubr.msk.f32.vlgmr.msra.gmra.mxu0 %vm79_vm0, %v2139_v41 }
0x1093   :  { %3543 = vmatpush3.msra.mxu0 %v2020_v23 }
0x1094   :  { %3544 = vmatprep.subr.mxu0 %v2019_v49 }
0x1095   :  { %3545 = vmatpush3.msra.mxu0 %v2019_v49 }
0x1096   :  { %3546 = vmatprep.subr.mxu0 %v2018_v55 }
0x1097   :  { %3547 = vmatpush3.msra.mxu0 %v2018_v55 }
0x1098   :  { %3548 = vmatprep.subr.mxu0 %v2017_v50 }
0x1099   :  { %3549 = vmatpush3.msra.mxu0 %v2017_v50  ;;  %v2675_v50 = vld [vmem:[#allocation2 + $0x408] sm:$0xff] }
0x109a   :  { %3550 = vmatprep.subr.mxu0 %v2016_v51 }
0x109b   :  { %3551 = vmatpush3.msra.mxu0 %v2016_v51  ;;  %v2674_v51 = vld [vmem:[#allocation2 + $0x400] sm:$0xff] }
0x109c   :  { %3552 = vmatprep.subr.mxu0 %v2015_v38 }
0x109d   :  { %3553 = vmatpush3.msra.mxu0 %v2015_v38  ;;  %v2673_v38 = vld [vmem:[#allocation2 + $0x3f8] sm:$0xff] }
0x109e   :  { %3554 = vmatprep.subr.mxu0 %v2014_v57 }
0x109f   :  { %3555 = vmatpush3.msra.mxu0 %v2014_v57  ;;  %v2672_v57 = vld [vmem:[#allocation2 + $0x3f0] sm:$0xff] }
0x10a0   :  { %3556 = vmatprep.subr.mxu0 %v2013_v47 }
0x10a1   :  { %3557 = vmatpush3.msra.mxu0 %v2013_v47  ;;  %v2671_v47 = vld [vmem:[#allocation2 + $0x3e8] sm:$0xff] }
0x10a2   :  { %3572 = vmatprep.subr.mxu0 %v2443_v56 }
0x1152   :  { %v3541_v1 = vpop.f32.mrf.mxu0 }
0x1153   :  { %v2218_v3 = vadd.f32 %v3541_v1, %v3911_v2  ;;  %v2306_v2 = vld [vmem:[#allocation2 + $0x348] sm:$0xff]  ;;  %v2668_v1 = vld [vmem:[#allocation2 + $0x3d0] sm:$0xff] }
0x1154   :  { %v2212_v5 = vpop.f32.mrf.mxu0  ;;  %3567 = vmatprep.subr.mxu1 %v2306_v2 }
0x1155   :  { %v2213_v48 = vadd.f32 %v2212_v5, %v3913_v6  ;;  %3667 = vrcp.f32 %v2218_v3  ;;  %3568 = vmatpush3.msra.mxu1 %v2306_v2  ;;  %v3024_v3 = vld [vmem:[#allocation2 + $0x3a0] ss:$0 sm:$0xff] }
0x1156   :  { %3583 = vmatprep.subr.mxu1 %v2533_v58 }
0x1157   :  { %3669 = vrcp.f32 %v2213_v48 }
0x1162   :  { %v3668_v7 = vpop.eup %3667 }
0x1163   :  { %v4062_v29 = vmul.f32 %v3668_v7, %v2139_v41 }
0x1164   :  { %v3670_v24 = vpop.eup %3669 }
0x1165   :  { %v4060_v52 = vmul.f32 %v3670_v24, %v2138_v39  ;;  %v3023_v39 = vld [vmem:[#allocation2 + $0x378] ss:$0 sm:$0xff] }
0x1167   :  { %3558 = vmatprep.mubr.msk.f32.mxu0 %vm79_vm0, %v4060_v52 }
0x1168   :  { %3559 = vmatmul.mubr.msk.f32.vlgmr.msra.gmra.mxu0 %vm79_vm0, %v4062_v29 }
0x1169   :  { %3573 = vmatpush3.msra.mxu0 %v2443_v56 }
0x116a   :  { %3574 = vmatprep.subr.mxu0 %v2442_v59 }
0x116b   :  { %3575 = vmatpush3.msra.mxu0 %v2442_v59 }
0x116c   :  { %3576 = vmatprep.subr.mxu0 %v2441_v62 }
0x116d   :  { %3577 = vmatpush3.msra.mxu0 %v2441_v62 }
0x116e   :  { %3578 = vmatprep.subr.mxu0 %v2440_v60 }
0x116f   :  { %3579 = vmatpush3.msra.mxu0 %v2440_v60 }
0x1170   :  { %3594 = vmatprep.subr.mxu0 %v2675_v50 }
0x1228   :  { %v3560_v6 = vpop.f32.mrf.mxu0 }
0x122a   :  { %v2297_v35 = vpop.f32.mrf.mxu0 }
0x122b   :  { %3569 = vmatprep.mubr.msk.f32.mxu1 %vm163_vm3, %v2297_v35 }
0x122c   :  { %3570 = vmatmul.mubr.msk.f32.vlgmr.msra.gmra.mxu1 %vm163_vm3, %v3560_v6 }
0x122d   :  { %3584 = vmatpush3.msra.mxu1 %v2533_v58 }
0x122e   :  { %3585 = vmatprep.subr.mxu1 %v2532_v0 }
0x122f   :  { %3586 = vmatpush3.msra.mxu1 %v2532_v0 }
0x1230   :  { %3587 = vmatprep.subr.mxu1 %v2531_v9 }
0x1231   :  { %3588 = vmatpush3.msra.mxu1 %v2531_v9 }
0x1232   :  { %3589 = vmatprep.subr.mxu1 %v2530_v4 }
0x1233   :  { %3590 = vmatpush3.msra.mxu1 %v2530_v4 }
0x12ec   :  { %v3571_v36 = vpop.f32.mrf.mxu1 }
0x12ed   :  { %v2392_v42 = vadd.f32 %v3571_v36, %v3948_v8 }
0x12ee   :  { %v2382_v43 = vpop.f32.mrf.mxu1 }
0x12ef   :  { %v4071_v13 = vadd.f32 %v3021_v40, %v2392_v42  ;;  %v2391_v45 = vadd.f32 %v2382_v43, %v3951_v10 }
0x12f1   :  { %v4074_v14 = vadd.f32 %v3021_v40, %v2391_v45  ;;  %v2405_v15 = vsel %vm163_vm3, %v4071_v13, 0.0 }
0x12f2   :  { %2406 = vadd.xlane.f32.xlu0 %v2405_v15 }
0x12f3   :  { %v2402_v16 = vsel %vm163_vm3, %v4074_v14, 0.0 }
0x12f4   :  { %2403 = vadd.xlane.f32.xlu1 %v2402_v16 }
0x137b   :  { %v2407_v17 = vpop.xlane.xlu0 %2406 }
0x137c   :  { %v2409_v46 = vmul.f32 0.03125, %v2407_v17 }
0x137d   :  { %v2404_v18 = vpop.xlane.xlu1 %2403 }
0x137e   :  { %v2411_v8 = vsub.f32 %v4071_v13, %v2409_v46  ;;  %v2408_v19 = vmul.f32 0.03125, %v2404_v18 }
0x1380   :  { %v2410_v20 = vsub.f32 %v4074_v14, %v2408_v19  ;;  %v2413_v44 = vmul.f32 %v2411_v8, %v2411_v8 }
0x1382   :  { %v2417_v10 = vsel %vm163_vm3, %v2413_v44, 0.0  ;;  %v2412_v54 = vmul.f32 %v2410_v20, %v2410_v20 }
0x1383   :  { %2418 = vadd.xlane.f32.xlu0 %v2417_v10 }
0x1384   :  { %v2414_v37 = vsel %vm163_vm3, %v2412_v54, 0.0 }
0x1385   :  { %2415 = vadd.xlane.f32.xlu1 %v2414_v37 }
0x140c   :  { %v2419_v11 = vpop.xlane.xlu0 %2418 }
0x140d   :  { %v2421_v12 = vmul.f32 0.03125, %v2419_v11 }
0x140e   :  { %v2416_v23 = vpop.xlane.xlu1 %2415 }
0x140f   :  { %v2423_v25 = vadd.f32 1e-05, %v2421_v12  ;;  %v2420_v26 = vmul.f32 0.03125, %v2416_v23 }
0x1411   :  { %3671 = vrsqrt.f32 %v2423_v25  ;;  %v2422_v27 = vadd.f32 1e-05, %v2420_v26 }
0x1413   :  { %3673 = vrsqrt.f32 %v2422_v27 }
0x141e   :  { %v3672_v32 = vpop.eup %3671 }
0x141f   :  { %v2427_v30 = vmul.f32 %v3672_v32, %v2411_v8 }
0x1420   :  { %v3674_v34 = vpop.eup %3673 }
0x1421   :  { %v2426_v31 = vmul.f32 %v3674_v34, %v2410_v20  ;;  %v2433_v33 = vmul.f32 %v3022_v28, %v2427_v30 }
0x1423   :  { %v2432_v41 = vmul.f32 %v3022_v28, %v2426_v31  ;;  %v2439_v55 = vadd.f32 %v3023_v39, %v2433_v33 }
0x1425   :  { %v2438_v49 = vadd.f32 %v3023_v39, %v2432_v41 }
0x1427   :  { %3580 = vmatprep.mubr.msk.f32.mxu0 %vm163_vm3, %v2438_v49  ;;  %3591 = vmatprep.mubr.msk.f32.mxu1 %vm163_vm3, %v2438_v49 }
0x1428   :  { %3581 = vmatmul.mubr.msk.f32.vlgmr.msra.gmra.mxu0 %vm163_vm3, %v2439_v55  ;;  %3592 = vmatmul.mubr.msk.f32.vlgmr.msra.gmra.mxu1 %vm163_vm3, %v2439_v55 }
0x1429   :  { %3595 = vmatpush3.msra.mxu0 %v2675_v50 }
0x142a   :  { %3596 = vmatprep.subr.mxu0 %v2674_v51 }
0x142b   :  { %3597 = vmatpush3.msra.mxu0 %v2674_v51 }
0x142c   :  { %3598 = vmatprep.subr.mxu0 %v2673_v38 }
0x142d   :  { %3599 = vmatpush3.msra.mxu0 %v2673_v38 }
0x142e   :  { %3600 = vmatprep.subr.mxu0 %v2672_v57 }
0x142f   :  { %3601 = vmatpush3.msra.mxu0 %v2672_v57  ;;  %v3027_v57 = vld [vmem:[#allocation2 + $0x3c8] ss:$0 sm:$0xff] }
0x1430   :  { %3602 = vmatprep.subr.mxu0 %v2671_v47 }
0x1431   :  { %3603 = vmatpush3.msra.mxu0 %v2671_v47 }
0x1432   :  { %3604 = vmatprep.subr.mxu0 %v2670_v61 }
0x1433   :  { %3605 = vmatpush3.msra.mxu0 %v2670_v61 }
0x1434   :  { %3606 = vmatprep.subr.mxu0 %v2669_v63 }
0x1435   :  { %3607 = vmatpush3.msra.mxu0 %v2669_v63 }
0x1436   :  { %3608 = vmatprep.subr.mxu0 %v2668_v1 }
0x1437   :  { %3609 = vmatpush3.msra.mxu0 %v2668_v1 }
0x14e8   :  { %v3582_v5 = vpop.f32.mrf.mxu0  ;;  %v3593_v33 = vpop.f32.mrf.mxu1 }
0x14e9   :  { %v2527_v48 = vadd.f32 %v3582_v5, %v3024_v3  ;;  %v2611_v5 = vadd.f32 %v3593_v33, %v3027_v57 }
0x14ea   :  { %v2521_v7 = vpop.f32.mrf.mxu0  ;;  %v2605_v51 = vpop.f32.mrf.mxu1 }
0x14eb   :  { %v2617_v24 = vmul.f32 0.70710677, %v2527_v48  ;;  %v2522_v53 = vadd.f32 %v3024_v3, %v2521_v7  ;;  %v2615_v50 = vmul.f32 0.5, %v2527_v48  ;;  %v2606_v1 = vadd.f32 %v3027_v57, %v2605_v51 }
0x14ed   :  { %v2619_v2 = vand.u32 2147483647, %v2617_v24  ;;  %v2616_v6 = vmul.f32 0.70710677, %v2522_v53  ;;  %vm2657_vm7 = vcmp.ge.f32.partialorder %v2617_v24, 0.0  ;;  %v2614_v47 = vmul.f32 0.5, %v2522_v53 }
0x14ef   :  { %v2621_v35 = vmul.f32 0.3275911, %v2619_v2  ;;  %v2618_v36 = vand.u32 2147483647, %v2616_v6  ;;  %v2645_v45 = vsub.f32 0.0, %v2619_v2  ;;  %vm2656_vm8 = vcmp.ge.f32.partialorder %v2616_v6, 0.0 }
0x14f1   :  { %v2623_v40 = vadd.f32 1.0, %v2621_v35  ;;  %v2620_v42 = vmul.f32 0.3275911, %v2618_v36  ;;  %v2644_v15 = vsub.f32 0.0, %v2618_v36  ;;  %v2647_v16 = vmul.f32 %v2645_v45, %v2619_v2  ;;  %v3032_v35 = vld [vmem:[#allocation2 + $0x410] ss:$0 sm:$0xff] }
0x14f3   :  { %3675 = vrcp.f32 %v2623_v40  ;;  %v2622_v43 = vadd.f32 1.0, %v2620_v42  ;;  %v2646_v46 = vmul.f32 %v2644_v15, %v2618_v36  ;;  %v2650_v18 = vmul.f32 1.442695, %v2647_v16 }
0x14f5   :  { %3677 = vrcp.f32 %v2622_v43  ;;  %v2648_v44 = vmul.f32 1.442695, %v2646_v46 }
0x14f6   :  { %3679 = vpow2.f32 %v2650_v18 }
0x14f7   :  { %3681 = vpow2.f32 %v2648_v44  ;;  %v2808_v44 = vld [vmem:[#allocation2 + $0x70] sm:$0xff] }
0x1500   :  { %v3676_v17 = vpop.eup %3675 }
0x1501   :  { %v2627_v8 = vmul.f32 1.0614054, %v3676_v17 }
0x1502   :  { %v3678_v19 = vpop.eup %3677 }
0x1503   :  { %v2629_v20 = vadd.f32 -1.4531521, %v2627_v8  ;;  %v2626_v10 = vmul.f32 1.0614054, %v3678_v19  ;;  %v3680_v25 = vpop.eup %3679 }
0x1504   :  { %v3682_v28 = vpop.eup %3681 }
0x1505   :  { %v2631_v54 = vmul.f32 %v3676_v17, %v2629_v20  ;;  %v2628_v37 = vadd.f32 -1.4531521, %v2626_v10  ;;  %v2809_v20 = vld [vmem:[#allocation2 + $0x78] sm:$0xff]  ;;  %v2807_v10 = vld [vmem:[#allocation2 + $0x68] sm:$0xff] }
0x1506   :  { %3613 = vmatprep.subr.mxu1 %v2809_v20 }
0x1507   :  { %v2633_v56 = vadd.f32 1.4214138, %v2631_v54  ;;  %v2630_v58 = vmul.f32 %v3678_v19, %v2628_v37  ;;  %3614 = vmatpush3.msra.mxu1 %v2809_v20  ;;  %v2806_v54 = vld [vmem:[#allocation2 + $0x60] sm:$0xff] }
0x1508   :  { %3615 = vmatprep.subr.mxu1 %v2808_v44 }
0x1509   :  { %v2635_v59 = vmul.f32 %v3676_v17, %v2633_v56  ;;  %v2632_v0 = vadd.f32 1.4214138, %v2630_v58  ;;  %3616 = vmatpush3.msra.mxu1 %v2808_v44 }
0x150a   :  { %3617 = vmatprep.subr.mxu1 %v2807_v10 }
0x150b   :  { %v2637_v62 = vadd.f32 -0.28449672, %v2635_v59  ;;  %v2634_v9 = vmul.f32 %v3678_v19, %v2632_v0  ;;  %3618 = vmatpush3.msra.mxu1 %v2807_v10 }
0x150c   :  { %3619 = vmatprep.subr.mxu1 %v2806_v54 }
0x150d   :  { %v2639_v60 = vmul.f32 %v3676_v17, %v2637_v62  ;;  %v2636_v4 = vadd.f32 -0.28449672, %v2634_v9  ;;  %3620 = vmatpush3.msra.mxu1 %v2806_v54 }
0x150f   :  { %v2641_v11 = vadd.f32 0.2548296, %v2639_v60  ;;  %v2638_v12 = vmul.f32 %v3678_v19, %v2636_v4 }
0x1511   :  { %v2643_v23 = vmul.f32 %v3676_v17, %v2641_v11  ;;  %v2640_v26 = vadd.f32 0.2548296, %v2638_v12  ;;  %v3033_v11 = vld [vmem:[#allocation2 + $0x50] ss:$0 sm:$0xff] }
0x1513   :  { %v2653_v27 = vmul.f32 %v3680_v25, %v2643_v23  ;;  %v2642_v32 = vmul.f32 %v3678_v19, %v2640_v26 }
0x1515   :  { %v2655_v30 = vsub.f32 1.0, %v2653_v27  ;;  %v2652_v34 = vmul.f32 %v3682_v28, %v2642_v32 }
0x1517   :  { %v2659_v31 = vsub.f32 0.0, %v2655_v30  ;;  %v2654_v39 = vsub.f32 1.0, %v2652_v34 }
0x1519   :  { %v2661_v41 = vsel %vm2657_vm7, %v2655_v30, %v2659_v31  ;;  %v2658_v55 = vsub.f32 0.0, %v2654_v39  ;;  %v3035_v30 = vld [vmem:[#allocation2 + $0x80] ss:$0 sm:$0xff] }
0x151a   :  { %v2663_v49 = vadd.f32 1.0, %v2661_v41 }
0x151b   :  { %v2660_v38 = vsel %vm2656_vm8, %v2654_v39, %v2658_v55 }
0x151c   :  { %v2662_v61 = vadd.f32 1.0, %v2660_v38  ;;  %v2665_v63 = vmul.f32 %v2663_v49, %v2615_v50 }
0x151e   :  { %v2664_v3 = vmul.f32 %v2662_v61, %v2614_v47  ;;  %v2667_v2 = vmul.f32 %v2665_v63, %v2611_v5 }
0x1520   :  { %v2666_v7 = vmul.f32 %v2664_v3, %v2606_v1 }
0x1522   :  { %3610 = vmatprep.mubr.msk.f32.mxu0 %vm79_vm0, %v2666_v7 }
0x1523   :  { %3611 = vmatmul.mubr.msk.f32.vlgmr.msra.gmra.mxu0 %vm79_vm0, %v2667_v2 }
0x15e3   :  { %v3612_v24 = vpop.f32.mrf.mxu0 }
0x15e4   :  { %v2758_v6 = vadd.f32 %v3612_v24, %v4071_v13 }
0x15e5   :  { %v2748_v48 = vpop.f32.mrf.mxu0 }
0x15e6   :  { %v2757_v36 = vadd.f32 %v2748_v48, %v4074_v14  ;;  %v2765_v40 = vadd.f32 %v3032_v35, %v2758_v6 }
0x15e8   :  { %v2771_v53 = vsel %vm163_vm3, %v2765_v40, 0.0  ;;  %v2764_v42 = vadd.f32 %v3032_v35, %v2757_v36 }
0x15e9   :  { %2772 = vadd.xlane.f32.xlu0 %v2771_v53 }
0x15ea   :  { %v2768_v43 = vsel %vm163_vm3, %v2764_v42, 0.0 }
0x15eb   :  { %2769 = vadd.xlane.f32.xlu1 %v2768_v43 }
0x1672   :  { %v2773_v45 = vpop.xlane.xlu0 %2772 }
0x1673   :  { %v2775_v15 = vmul.f32 0.03125, %v2773_v45 }
0x1674   :  { %v2770_v16 = vpop.xlane.xlu1 %2769 }
0x1675   :  { %v2777_v17 = vsub.f32 %v2765_v40, %v2775_v15  ;;  %v2774_v46 = vmul.f32 0.03125, %v2770_v16 }
0x1677   :  { %v2776_v18 = vsub.f32 %v2764_v42, %v2774_v46  ;;  %v2779_v8 = vmul.f32 %v2777_v17, %v2777_v17 }
0x1679   :  { %v2783_v13 = vsel %vm163_vm3, %v2779_v8, 0.0  ;;  %v2778_v19 = vmul.f32 %v2776_v18, %v2776_v18 }
0x167a   :  { %2784 = vadd.xlane.f32.xlu0 %v2783_v13 }
0x167b   :  { %v2780_v14 = vsel %vm163_vm3, %v2778_v19, 0.0 }
0x167c   :  { %2781 = vadd.xlane.f32.xlu1 %v2780_v14 }
0x168d   :  { %2898 = vrot.lane.b32.xlu1 %v4060_v52, %s3714_s0 }
0x1690   :  { %2900 = vrot.lane.b32.xlu0 %v4062_v29, %s3714_s0 }
0x1703   :  { %v2785_v37 = vpop.xlane.xlu0 %2784 }
0x1704   :  { %v2787_v56 = vmul.f32 0.03125, %v2785_v37 }
0x1705   :  { %v2782_v58 = vpop.xlane.xlu1 %2781 }
0x1706   :  { %v2789_v59 = vadd.f32 1e-05, %v2787_v56  ;;  %v2786_v0 = vmul.f32 0.03125, %v2782_v58 }
0x1707   :  { %v2901_v62 = vpop.permute.xlu0 %2900 }
0x1708   :  { %3683 = vrsqrt.f32 %v2789_v59  ;;  %v2788_v9 = vadd.f32 1e-05, %v2786_v0  ;;  %v2905_v52 = vsel %vm79_vm0, %v3919_v22, %v2901_v62  ;;  %v3034_v22 = vld [vmem:[#allocation2 + $0x58] ss:$0 sm:$0xff] }
0x1709   :  { %2907 = vst [vmem:[%s4119_s3 + $0x8] sm:$0xff] %v2905_v52  ;;  %v2899_v29 = vpop.permute.xlu1 %2898 }
0x170a   :  { %3685 = vrsqrt.f32 %v2788_v9  ;;  %v2904_v60 = vsel %vm79_vm0, %v3917_v21, %v2899_v29 }
0x170b   :  { %2906 = vst [vmem:[%s4119_s3] sm:$0xff] %v2904_v60 }
0x1715   :  { %v3684_v4 = vpop.eup %3683 }
0x1716   :  { %v2793_v12 = vmul.f32 %v3684_v4, %v2777_v17 }
0x1717   :  { %v3686_v23 = vpop.eup %3685 }
0x1718   :  { %v2792_v25 = vmul.f32 %v3686_v23, %v2776_v18  ;;  %v2799_v26 = vmul.f32 %v3033_v11, %v2793_v12 }
0x171a   :  { %v2798_v27 = vmul.f32 %v3033_v11, %v2792_v25  ;;  %v2805_v28 = vadd.f32 %v3034_v22, %v2799_v26 }
0x171c   :  { %v2804_v32 = vadd.f32 %v3034_v22, %v2798_v27 }
0x171e   :  { %3621 = vmatprep.mubr.msk.f32.mxu1 %vm163_vm3, %v2804_v32 }
0x171f   :  { %3622 = vmatmul.mubr.msk.f32.vlgmr.msra.gmra.mxu1 %vm163_vm3, %v2805_v28 }
0x17df   :  { %v3623_v21 = vpop.f32.mrf.mxu1 }
0x17e0   :  { %v2893_v34 = vadd.f32 %v3623_v21, %v3035_v30 }
0x17e1   :  { %v2887_v31 = vpop.f32.mrf.mxu1 }
0x17e2   :  { %2897 = vst [vmem:[%s4118_s2 + $0x8] sm:$0xff] %v2893_v34  ;;  %v2888_v33 = vadd.f32 %v3035_v30, %v2887_v31 }
0x17e4   :  { %2896 = vst [vmem:[%s4118_s2] sm:$0xff] %v2888_v33 }
0x17e5   :  { %2916 = vsyncpa [#allocation3], 1 }

</bundles_post_ra>
